<compile_context>
chip_gen: v7x
topology: tpu7x:2x2x1
jax: 0.10.0
libtpu: 0.0.40
codegen_flags: <defaults>
</compile_context>

<pallas_src>
import functools
import math

import jax
import jax.numpy as jnp
from jax.experimental import pallas as pl
from jax.experimental.pallas import tpu as pltpu


# ----------------------------- config -----------------------------

class Config:
    vocab_size = 100
    hidden = 128        # lane-dense (multiple of 128)
    num_heads = 2       # head_dim = 64
    num_layers = 2
    intermediate = 256  # lane-dense
    max_pos = 16
    type_vocab = 2
    cls_hidden = 128    # classifier head hidden size (matches nn.Linear(H, 128))
    ln_eps = 1e-12


# MXU-native operand dtype (f32 accumulation everywhere via preferred_element_type).
# NOTE: loading pretrained f32 checkpoints through this path would quantize them to bf16.
MATMUL_DTYPE = jnp.bfloat16


# ----------------------------- in-kernel helpers -----------------------------

def _layernorm(x, g, b, eps):
    mu = jnp.mean(x, axis=-1, keepdims=True)
    xc = x - mu
    var = jnp.mean(xc * xc, axis=-1, keepdims=True)
    return xc * jax.lax.rsqrt(var + eps) * g + b


def _gelu(x):
    # tanh-approximate GELU (EUP-friendly); HF BERT uses erf-GELU.
    c = jnp.float32(math.sqrt(2.0 / math.pi))
    return 0.5 * x * (1.0 + jnp.tanh(c * (x + 0.044715 * x * x * x)))


# ----------------------------- fused encoder + head kernel -----------------------------
# grid=(L,) sequential ("arbitrary"). Hidden state (B*S, H) lives in a bf16 VMEM
# scratch across layers; per-layer weights are streamed via the layer index_map.
# The pooler + classifier head runs only at l == L-1 and writes the (B,1) output.

def _encoder_head_kernel(
    h0_ref, mask_ref, emb_g_ref, emb_b_ref,
    qkv_w_ref, qkv_b_ref, o_w_ref, o_b_ref, ln1_g_ref, ln1_b_ref,
    i_w_ref, i_b_ref, f_w_ref, f_b_ref, ln2_g_ref, ln2_b_ref,
    pool_w_ref, pool_b_ref, c1_w_ref, c1_b_ref, c2_w_ref, c2_b_ref,
    probs_ref, h_scr,
    *, B, S, nh, dh, eps):
    l = pl.program_id(0)
    H = nh * dh
    BS = B * S

    # Layer 0: raw summed embeddings arrive; apply the embedding LayerNorm once
    # and park the (bf16) hidden state in VMEM for the rest of the network.
    @pl.when(l == 0)
    def _():
        h_scr[...] = _layernorm(h0_ref[...], emb_g_ref[...], emb_b_ref[...],
                                eps).astype(h_scr.dtype)

    x_bf = h_scr[...]                                           # (B*S, H) bf16, MXU-ready
    x_f32 = x_bf.astype(jnp.float32)                            # for residual / LN only

    # ---- fused QKV projection (one (H, 3H) lane-dense matmul) ----
    qkv = jnp.dot(x_bf, qkv_w_ref[...],
                  preferred_element_type=jnp.float32) + qkv_b_ref[...]   # (B*S, 3H) f32

    # Additive mask broadcast materialized ONCE per layer (no per-head re-broadcast).
    ext = jnp.broadcast_to(mask_ref[...][:, None, :], (B, S, S))         # (B, S, S) f32

    # ---- multi-head self-attention ----
    # Heads are folded straight into the output projection (no lane-axis concat):
    #   attn_out = sum_h  softmax(q_h k_h^T + mask) v_h  @  o_w[h*dh:(h+1)*dh, :]
    # 1/sqrt(dh) is already baked into the Q columns of qkv_w at init time.
    o_w = o_w_ref[...]                                          # (H, H) bf16
    attn_out = jnp.zeros((BS, H), jnp.float32)
    for hh in range(nh):                                        # static unroll (nh small)
        lo = hh * dh
        qh = qkv[:, lo:lo + dh].reshape(B, S, dh)
        kh = qkv[:, H + lo:H + lo + dh].reshape(B, S, dh)
        vh = qkv[:, 2 * H + lo:2 * H + lo + dh].reshape(B, S, dh)

        s = jnp.einsum("bqd,bkd->bqk",
                       qh.astype(MATMUL_DTYPE), kh.astype(MATMUL_DTYPE),
                       preferred_element_type=jnp.float32) + ext          # (B, S, S) f32
        m = jnp.max(s, axis=-1, keepdims=True)
        p = jnp.exp(s - m)
        p = p * pl.reciprocal(jnp.sum(p, axis=-1, keepdims=True), approx=True)  # EUP
        ctx_h = jnp.einsum("bqk,bkd->bqd",
                           p.astype(MATMUL_DTYPE), vh.astype(MATMUL_DTYPE),
                           preferred_element_type=jnp.float32)            # (B, S, dh)
        attn_out = attn_out + jnp.dot(ctx_h.reshape(BS, dh).astype(MATMUL_DTYPE),
                                      o_w[lo:lo + dh, :],
                                      preferred_element_type=jnp.float32)

    h1 = _layernorm(x_f32 + attn_out + o_b_ref[...],
                    ln1_g_ref[...], ln1_b_ref[...], eps)        # (B*S, H) f32

    # ---- fused FFN: intermediate -> GELU -> output -> residual + LN ----
    inter = _gelu(jnp.dot(h1.astype(MATMUL_DTYPE), i_w_ref[...],
                          preferred_element_type=jnp.float32) + i_b_ref[...])
    ffn = jnp.dot(inter.astype(MATMUL_DTYPE), f_w_ref[...],
                  preferred_element_type=jnp.float32) + f_b_ref[...]
    h2 = _layernorm(h1 + ffn, ln2_g_ref[...], ln2_b_ref[...], eps)

    h_scr[...] = h2.astype(h_scr.dtype)                         # stays VMEM-resident (bf16)

    # ---- fused pooler + classifier head at the last layer ----
    @pl.when(l == pl.num_programs(0) - 1)
    def _():
        cls = h2.reshape(B, S, H)[:, 0, :]                      # [CLS] rows, (B, H) f32
        pooled = jnp.tanh(jnp.dot(cls.astype(MATMUL_DTYPE), pool_w_ref[...],
                                  preferred_element_type=jnp.float32) + pool_b_ref[...])
        z = jnp.maximum(jnp.dot(pooled.astype(MATMUL_DTYPE), c1_w_ref[...],
                                preferred_element_type=jnp.float32) + c1_b_ref[...], 0.0)
        # Linear(128,1): VPU multiply + lane reduction (no N=1 MXU pass).
        logit = jnp.sum(z * c2_w_ref[...], axis=-1, keepdims=True) + c2_b_ref[...]
        # exact sigmoid keeps probabilities strictly within [0, 1]
        probs_ref[...] = 1.0 / (1.0 + jnp.exp(-logit))          # (B, 1), single tiny store


def bert_classifier(h0, ext_mask, params, cfg):
    B_S, H = h0.shape
    B, S = ext_mask.shape
    L = cfg.num_layers
    nh = cfg.num_heads
    dh = H // nh
    I = cfg.intermediate
    CH = cfg.cls_hidden
    st = params["stacked"]

    const = lambda shape: pl.BlockSpec(shape, lambda l: (0,) * len(shape))
    per_layer = lambda shape: pl.BlockSpec((None,) + shape, lambda l: (l, 0, 0))

    kern = functools.partial(_encoder_head_kernel, B=B, S=S, nh=nh, dh=dh, eps=cfg.ln_eps)

    return pl.pallas_call(
        kern,
        out_shape=jax.ShapeDtypeStruct((B, 1), jnp.float32),
        grid_spec=pltpu.PrefetchScalarGridSpec(
            num_scalar_prefetch=0,
            grid=(L,),
            in_specs=[
                const((B_S, H)),           # summed embeddings (pre-LN), used at l==0
                const((B, S)),             # additive attention mask row
                const((1, H)),             # embedding LN gamma
                const((1, H)),             # embedding LN beta
                per_layer((H, 3 * H)),     # fused QKV weight (Q columns pre-scaled)
                per_layer((1, 3 * H)),     # fused QKV bias
                per_layer((H, H)),         # attention output weight
                per_layer((1, H)),         # attention output bias
                per_layer((1, H)),         # LN1 gamma
                per_layer((1, H)),         # LN1 beta
                per_layer((H, I)),         # FFN intermediate weight
                per_layer((1, I)),         # FFN intermediate bias
                per_layer((I, H)),         # FFN output weight
                per_layer((1, H)),         # FFN output bias
                per_layer((1, H)),         # LN2 gamma
                per_layer((1, H)),         # LN2 beta
                const((H, H)),             # pooler weight   (VMEM-resident, fetched once)
                const((1, H)),             # pooler bias
                const((H, CH)),            # classifier Linear(H,128) weight
                const((1, CH)),            # classifier Linear(H,128) bias
                const((1, CH)),            # classifier Linear(128,1) weight (as a lane row)
                const((1, 1)),             # classifier Linear(128,1) bias
            ],
            out_specs=pl.BlockSpec((B, 1), lambda l: (0, 0)),
            scratch_shapes=[pltpu.VMEM((B_S, H), MATMUL_DTYPE)],   # resident hidden (bf16)
        ),
        compiler_params=pltpu.CompilerParams(
            # Layer axis is a sequential carry -> "arbitrary"; a row-tile "parallel"
            # axis would be added at real shapes for v7x megacore sharding.
            dimension_semantics=("arbitrary",),
            # Explicit VMEM budget; at BERT-base scale on v7x (64 MiB physical) the
            # FFN weights would also get pipeline_mode=pl.Buffered(1) or K/N tiling.
            vmem_limit_bytes=32 * 1024 * 1024,
        ),
    )(h0, ext_mask, params["emb_ln_g"], params["emb_ln_b"],
      st["qkv_w"], st["qkv_b"], st["o_w"], st["o_b"], st["ln1_g"], st["ln1_b"],
      st["i_w"], st["i_b"], st["f_w"], st["f_b"], st["ln2_g"], st["ln2_b"],
      params["pool_w"], params["pool_b"], params["cls1_w"], params["cls1_b"],
      params["cls2_w"], params["cls2_b"])


# ----------------------------- parameters -----------------------------

def init_params(key, cfg):
    H, I, L = cfg.hidden, cfg.intermediate, cfg.num_layers
    CH = cfg.cls_hidden
    dh = H // cfg.num_heads
    qk_scale = 1.0 / math.sqrt(dh)

    def dense(k, fi, fo):
        return (jax.random.normal(k, (fi, fo), jnp.float32) * 0.02).astype(MATMUL_DTYPE)

    keys = jax.random.split(key, 7)
    params = {
        "word_emb": jax.random.normal(keys[0], (cfg.vocab_size, H), jnp.float32) * 0.02,
        "pos_emb": jax.random.normal(keys[1], (cfg.max_pos, H), jnp.float32) * 0.02,
        "type_emb": jax.random.normal(keys[2], (cfg.type_vocab, H), jnp.float32) * 0.02,
        "emb_ln_g": jnp.ones((1, H), jnp.float32),
        "emb_ln_b": jnp.zeros((1, H), jnp.float32),
        "pool_w": dense(keys[3], H, H),
        "pool_b": jnp.zeros((1, H), jnp.float32),
        "cls1_w": dense(keys[4], H, CH),
        "cls1_b": jnp.zeros((1, CH), jnp.float32),
        # stored as a (1, 128) lane row so the kernel does a VPU mul + lane reduction
        "cls2_w": dense(keys[5], 1, CH),
        "cls2_b": jnp.zeros((1, 1), jnp.float32),
    }

    def layer_mats(lk):
        ks = jax.random.split(lk, 6)
        # 1/sqrt(dh) folded into the Q columns (a loaded Q bias would need the same scale).
        q_w = jax.random.normal(ks[0], (H, H), jnp.float32) * 0.02 * qk_scale
        k_w = jax.random.normal(ks[1], (H, H), jnp.float32) * 0.02
        v_w = jax.random.normal(ks[2], (H, H), jnp.float32) * 0.02
        return {
            "qkv_w": jnp.concatenate([q_w, k_w, v_w], axis=-1).astype(MATMUL_DTYPE),
            "qkv_b": jnp.zeros((1, 3 * H), jnp.float32),
            "o_w": dense(ks[3], H, H),
            "o_b": jnp.zeros((1, H), jnp.float32),
            "ln1_g": jnp.ones((1, H), jnp.float32),
            "ln1_b": jnp.zeros((1, H), jnp.float32),
            "i_w": dense(ks[4], H, I),
            "i_b": jnp.zeros((1, I), jnp.float32),
            "f_w": dense(ks[5], I, H),
            "f_b": jnp.zeros((1, H), jnp.float32),
            "ln2_g": jnp.ones((1, H), jnp.float32),
            "ln2_b": jnp.zeros((1, H), jnp.float32),
        }

    per_layer = [layer_mats(lk) for lk in jax.random.split(keys[6], L)]
    params["stacked"] = {k: jnp.stack([ld[k] for ld in per_layer], axis=0)
                         for k in per_layer[0]}
    return params


# ----------------------------- forward pass -----------------------------

def forward(params, input_ids, attention_mask, cfg):
    B, S = input_ids.shape
    H = cfg.hidden

    # Embedding gathers are XLA glue; their LayerNorm is fused into the kernel.
    we = params["word_emb"][input_ids]                       # (B, S, H)
    pe = params["pos_emb"][:S][None, :, :]                   # (1, S, H)
    te = params["type_emb"][0][None, None, :]                # token_type_ids == 0
    h0 = (we + pe + te).reshape(B * S, H).astype(jnp.float32)

    # BERT-style additive mask kept as a (B, S) row; broadcast in-kernel.
    ext = (1.0 - attention_mask.astype(jnp.float32)) * -10000.0

    return bert_classifier(h0, ext, params, cfg)             # (B, 1) probabilities


# ----------------------------- main -----------------------------

if __name__ == "__main__":
    cfg = Config()
    B, S = 2, 8

    key = jax.random.PRNGKey(0)
    pkey, ikey = jax.random.split(key)
    params = init_params(pkey, cfg)

    input_ids = jax.random.randint(ikey, (B, S), 0, cfg.vocab_size, dtype=jnp.int32)
    attention_mask = jnp.ones((B, S), jnp.int32).at[1, S - 2:].set(0)  # pad tail of seq 1

    fwd = jax.jit(functools.partial(forward, cfg=cfg))
    probs = fwd(params, input_ids, attention_mask)
    jax.block_until_ready(probs)

    assert probs.shape == (B, 1)
    assert bool(jnp.all((probs >= 0.0) & (probs <= 1.0)))
    print("KERNEL_OK")
</pallas_src>

<mosaic_0001>
module attributes {stable_mosaic.version = 11 : i64} {
  func.func @_encoder_head_kernel(%arg0: i32, %arg1: memref<16x128xf32, #tpu.memory_space<vmem>>, %arg2: memref<2x8xf32, #tpu.memory_space<vmem>>, %arg3: memref<1x128xf32, #tpu.memory_space<vmem>>, %arg4: memref<1x128xf32, #tpu.memory_space<vmem>>, %arg5: memref<1x128x384xbf16, #tpu.memory_space<vmem>>, %arg6: memref<1x1x384xf32, #tpu.memory_space<vmem>>, %arg7: memref<1x128x128xbf16, #tpu.memory_space<vmem>>, %arg8: memref<1x1x128xf32, #tpu.memory_space<vmem>>, %arg9: memref<1x1x128xf32, #tpu.memory_space<vmem>>, %arg10: memref<1x1x128xf32, #tpu.memory_space<vmem>>, %arg11: memref<1x128x256xbf16, #tpu.memory_space<vmem>>, %arg12: memref<1x1x256xf32, #tpu.memory_space<vmem>>, %arg13: memref<1x256x128xbf16, #tpu.memory_space<vmem>>, %arg14: memref<1x1x128xf32, #tpu.memory_space<vmem>>, %arg15: memref<1x1x128xf32, #tpu.memory_space<vmem>>, %arg16: memref<1x1x128xf32, #tpu.memory_space<vmem>>, %arg17: memref<128x128xbf16, #tpu.memory_space<vmem>>, %arg18: memref<1x128xf32, #tpu.memory_space<vmem>>, %arg19: memref<128x128xbf16, #tpu.memory_space<vmem>>, %arg20: memref<1x128xf32, #tpu.memory_space<vmem>>, %arg21: memref<1x128xbf16, #tpu.memory_space<vmem>>, %arg22: memref<1x1xf32, #tpu.memory_space<vmem>>, %arg23: memref<2x1xf32, #tpu.memory_space<vmem>>, %arg24: memref<16x128xbf16, #tpu.memory_space<vmem>>) attributes {dimension_semantics = [#tpu.dimension_semantics<arbitrary>], iteration_bounds = array<i64: 2>, scalar_prefetch = 0 : i64, scratch_operands = 1 : i64, tpu.core_type = #tpu.core_type<tc>, window_params = [{pipeline_mode = #tpu.pipeline_mode<synchronous>, transform_indices = @transform_0, window_bounds = array<i64: 16, 128>}, {pipeline_mode = #tpu.pipeline_mode<synchronous>, transform_indices = @transform_1, window_bounds = array<i64: 2, 8>}, {pipeline_mode = #tpu.pipeline_mode<synchronous>, transform_indices = @transform_2, window_bounds = array<i64: 1, 128>}, {pipeline_mode = #tpu.pipeline_mode<synchronous>, transform_indices = @transform_3, window_bounds = array<i64: 1, 128>}, {transform_indices = @transform_4, window_bounds = array<i64: 1, 128, 384>}, {transform_indices = @transform_5, window_bounds = array<i64: 1, 1, 384>}, {transform_indices = @transform_6, window_bounds = array<i64: 1, 128, 128>}, {transform_indices = @transform_7, window_bounds = array<i64: 1, 1, 128>}, {transform_indices = @transform_8, window_bounds = array<i64: 1, 1, 128>}, {transform_indices = @transform_9, window_bounds = array<i64: 1, 1, 128>}, {transform_indices = @transform_10, window_bounds = array<i64: 1, 128, 256>}, {transform_indices = @transform_11, window_bounds = array<i64: 1, 1, 256>}, {transform_indices = @transform_12, window_bounds = array<i64: 1, 256, 128>}, {transform_indices = @transform_13, window_bounds = array<i64: 1, 1, 128>}, {transform_indices = @transform_14, window_bounds = array<i64: 1, 1, 128>}, {transform_indices = @transform_15, window_bounds = array<i64: 1, 1, 128>}, {pipeline_mode = #tpu.pipeline_mode<synchronous>, transform_indices = @transform_16, window_bounds = array<i64: 128, 128>}, {pipeline_mode = #tpu.pipeline_mode<synchronous>, transform_indices = @transform_17, window_bounds = array<i64: 1, 128>}, {pipeline_mode = #tpu.pipeline_mode<synchronous>, transform_indices = @transform_18, window_bounds = array<i64: 128, 128>}, {pipeline_mode = #tpu.pipeline_mode<synchronous>, transform_indices = @transform_19, window_bounds = array<i64: 1, 128>}, {pipeline_mode = #tpu.pipeline_mode<synchronous>, transform_indices = @transform_20, window_bounds = array<i64: 1, 128>}, {pipeline_mode = #tpu.pipeline_mode<synchronous>, transform_indices = @transform_21, window_bounds = array<i64: 1, 1>}, {pipeline_mode = #tpu.pipeline_mode<synchronous>, transform_indices = @transform_22, window_bounds = array<i64: 2, 1>}]} {
    %c0_i32 = arith.constant 0 : i32
    %0 = arith.cmpi eq, %arg0, %c0_i32 : i32
    %1 = arith.extui %0 : i1 to i32
    %c0_i32_0 = arith.constant 0 : i32
    %2 = arith.cmpi ne, %1, %c0_i32_0 : i32
    scf.if %2 {
      %c0_70 = arith.constant 0 : index
      %c0_71 = arith.constant 0 : index
      %163 = vector.load %arg1[%c0_70, %c0_71] : memref<16x128xf32, #tpu.memory_space<vmem>>, vector<16x128xf32>
      %c0_72 = arith.constant 0 : index
      %c0_73 = arith.constant 0 : index
      %164 = vector.load %arg3[%c0_72, %c0_73] : memref<1x128xf32, #tpu.memory_space<vmem>>, vector<1x128xf32>
      %c0_74 = arith.constant 0 : index
      %c0_75 = arith.constant 0 : index
      %165 = vector.load %arg4[%c0_74, %c0_75] : memref<1x128xf32, #tpu.memory_space<vmem>>, vector<1x128xf32>
      %cst_76 = arith.constant dense<0.000000e+00> : vector<16xf32>
      %166 = vector.multi_reduction <add>, %163, %cst_76 [1] : vector<16x128xf32> to vector<16xf32>
      %167 = vector.shape_cast %166 : vector<16xf32> to vector<16x1xf32>
      %cst_77 = arith.constant 1.280000e+02 : f32
      %168 = vector.broadcast %cst_77 : f32 to vector<16x1xf32>
      %169 = arith.divf %167, %168 : vector<16x1xf32>
      %170 = vector.broadcast %169 : vector<16x1xf32> to vector<16x128xf32>
      %171 = arith.subf %163, %170 : vector<16x128xf32>
      %172 = arith.mulf %171, %171 : vector<16x128xf32>
      %cst_78 = arith.constant dense<0.000000e+00> : vector<16xf32>
      %173 = vector.multi_reduction <add>, %172, %cst_78 [1] : vector<16x128xf32> to vector<16xf32>
      %174 = vector.shape_cast %173 : vector<16xf32> to vector<16x1xf32>
      %cst_79 = arith.constant 1.280000e+02 : f32
      %175 = vector.broadcast %cst_79 : f32 to vector<16x1xf32>
      %176 = arith.divf %174, %175 : vector<16x1xf32>
      %cst_80 = arith.constant 9.99999996E-13 : f32
      %177 = vector.broadcast %cst_80 : f32 to vector<16x1xf32>
      %178 = arith.addf %176, %177 : vector<16x1xf32>
      %179 = math.rsqrt %178 : vector<16x1xf32>
      %180 = vector.broadcast %179 : vector<16x1xf32> to vector<16x128xf32>
      %181 = arith.mulf %171, %180 : vector<16x128xf32>
      %182 = vector.broadcast %164 : vector<1x128xf32> to vector<16x128xf32>
      %183 = arith.mulf %181, %182 : vector<16x128xf32>
      %184 = vector.broadcast %165 : vector<1x128xf32> to vector<16x128xf32>
      %185 = arith.addf %183, %184 : vector<16x128xf32>
      %186 = arith.truncf %185 : vector<16x128xf32> to vector<16x128xbf16>
      %c0_81 = arith.constant 0 : index
      %c0_82 = arith.constant 0 : index
      %187 = vector.load %arg24[%c0_81, %c0_82] : memref<16x128xbf16, #tpu.memory_space<vmem>>, vector<16x128xbf16>
      tpu.vector_store %arg24[%c0_81, %c0_82], %186 {strides = array<i32>} : memref<16x128xbf16, #tpu.memory_space<vmem>>, vector<16x128xbf16>,
    } else {
    }
    %c0 = arith.constant 0 : index
    %c0_1 = arith.constant 0 : index
    %3 = vector.load %arg24[%c0, %c0_1] : memref<16x128xbf16, #tpu.memory_space<vmem>>, vector<16x128xbf16>
    %4 = arith.extf %3 : vector<16x128xbf16> to vector<16x128xf32>
    %c0_2 = arith.constant 0 : index
    %c0_3 = arith.constant 0 : index
    %c0_4 = arith.constant 0 : index
    %5 = vector.load %arg5[%c0_2, %c0_3, %c0_4] : memref<1x128x384xbf16, #tpu.memory_space<vmem>>, vector<1x128x384xbf16>
    %6 = vector.shape_cast %5 : vector<1x128x384xbf16> to vector<128x384xbf16>
    %cst = arith.constant dense<0.000000e+00> : vector<16x384xf32>
    %7 = tpu.matmul %3, %6, %cst {dimension_numbers = #tpu.dot_dimension_numbers<[1], [0], [0], [1], [0, 0, 1, 1], [], []>} : vector<16x128xbf16>, vector<128x384xbf16>, vector<16x384xf32> -> vector<16x384xf32>
    %c0_5 = arith.constant 0 : index
    %c0_6 = arith.constant 0 : index
    %c0_7 = arith.constant 0 : index
    %8 = vector.load %arg6[%c0_5, %c0_6, %c0_7] : memref<1x1x384xf32, #tpu.memory_space<vmem>>, vector<1x1x384xf32>
    %9 = vector.shape_cast %8 : vector<1x1x384xf32> to vector<1x384xf32>
    %10 = vector.broadcast %9 : vector<1x384xf32> to vector<16x384xf32>
    %11 = arith.addf %7, %10 : vector<16x384xf32>
    %c0_8 = arith.constant 0 : index
    %c0_9 = arith.constant 0 : index
    %12 = vector.load %arg2[%c0_8, %c0_9] : memref<2x8xf32, #tpu.memory_space<vmem>>, vector<2x8xf32>
    %13 = vector.shape_cast %12 : vector<2x8xf32> to vector<2x1x8xf32>
    %14 = vector.shape_cast %13 : vector<2x1x8xf32> to vector<2x1x8xf32>
    %15 = vector.broadcast %14 : vector<2x1x8xf32> to vector<2x8x8xf32>
    %c0_10 = arith.constant 0 : index
    %c0_11 = arith.constant 0 : index
    %c0_12 = arith.constant 0 : index
    %16 = vector.load %arg7[%c0_10, %c0_11, %c0_12] : memref<1x128x128xbf16, #tpu.memory_space<vmem>>, vector<1x128x128xbf16>
    %17 = vector.shape_cast %16 : vector<1x128x128xbf16> to vector<128x128xbf16>
    %cst_13 = arith.constant 0.000000e+00 : f32
    %18 = vector.broadcast %cst_13 : f32 to vector<16x128xf32>
    %19 = vector.extract_strided_slice %11 {offsets = [0, 0], sizes = [16, 64], strides = [1, 1]} : vector<16x384xf32> to vector<16x64xf32>
    %20 = vector.shape_cast %19 : vector<16x64xf32> to vector<2x8x64xf32>
    %21 = vector.extract_strided_slice %11 {offsets = [0, 128], sizes = [16, 64], strides = [1, 1]} : vector<16x384xf32> to vector<16x64xf32>
    %22 = vector.shape_cast %21 : vector<16x64xf32> to vector<2x8x64xf32>
    %23 = vector.extract_strided_slice %11 {offsets = [0, 256], sizes = [16, 64], strides = [1, 1]} : vector<16x384xf32> to vector<16x64xf32>
    %24 = vector.shape_cast %23 : vector<16x64xf32> to vector<2x8x64xf32>
    %25 = arith.truncf %20 : vector<2x8x64xf32> to vector<2x8x64xbf16>
    %26 = arith.truncf %22 : vector<2x8x64xf32> to vector<2x8x64xbf16>
    "tpu.trace_start"() <{level = 10 : i32, message = "bqd,bkd->bqk"}> : () -> ()
    %cst_14 = arith.constant dense<0.000000e+00> : vector<2x8x8xf32>
    %27 = tpu.matmul %25, %26, %cst_14 {dimension_numbers = #tpu.dot_dimension_numbers<[2], [2], [1], [1], [0, 0, 0, 1, 1, 1], [0], [0]>} : vector<2x8x64xbf16>, vector<2x8x64xbf16>, vector<2x8x8xf32> -> vector<2x8x8xf32>
    "tpu.trace_stop"() : () -> ()
    %28 = arith.addf %27, %15 : vector<2x8x8xf32>
    %cst_15 = arith.constant dense<0xFF800000> : vector<2x8xf32>
    %29 = vector.multi_reduction <maximumf>, %28, %cst_15 [2] : vector<2x8x8xf32> to vector<2x8xf32>
    %30 = vector.shape_cast %29 : vector<2x8xf32> to vector<2x8x1xf32>
    %31 = vector.broadcast %30 : vector<2x8x1xf32> to vector<2x8x8xf32>
    %32 = arith.subf %28, %31 : vector<2x8x8xf32>
    %33 = math.exp %32 : vector<2x8x8xf32>
    %cst_16 = arith.constant dense<0.000000e+00> : vector<2x8xf32>
    %34 = vector.multi_reduction <add>, %33, %cst_16 [2] : vector<2x8x8xf32> to vector<2x8xf32>
    %35 = vector.shape_cast %34 : vector<2x8xf32> to vector<2x8x1xf32>
    %36 = tpu.reciprocal %35 {approx = true} : vector<2x8x1xf32> -> vector<2x8x1xf32>
    %37 = vector.broadcast %36 : vector<2x8x1xf32> to vector<2x8x8xf32>
    %38 = arith.mulf %33, %37 : vector<2x8x8xf32>
    %39 = arith.truncf %38 : vector<2x8x8xf32> to vector<2x8x8xbf16>
    %40 = arith.truncf %24 : vector<2x8x64xf32> to vector<2x8x64xbf16>
    "tpu.trace_start"() <{level = 10 : i32, message = "bqk,bkd->bqd"}> : () -> ()
    %cst_17 = arith.constant dense<0.000000e+00> : vector<2x8x64xf32>
    %41 = tpu.matmul %39, %40, %cst_17 {dimension_numbers = #tpu.dot_dimension_numbers<[2], [1], [1], [2], [0, 0, 0, 1, 1, 2], [0], [0]>} : vector<2x8x8xbf16>, vector<2x8x64xbf16>, vector<2x8x64xf32> -> vector<2x8x64xf32>
    "tpu.trace_stop"() : () -> ()
    %42 = vector.shape_cast %41 : vector<2x8x64xf32> to vector<16x64xf32>
    %43 = arith.truncf %42 : vector<16x64xf32> to vector<16x64xbf16>
    %44 = vector.extract_strided_slice %17 {offsets = [0, 0], sizes = [64, 128], strides = [1, 1]} : vector<128x128xbf16> to vector<64x128xbf16>
    %cst_18 = arith.constant dense<0.000000e+00> : vector<16x128xf32>
    %45 = tpu.matmul %43, %44, %cst_18 {dimension_numbers = #tpu.dot_dimension_numbers<[1], [0], [0], [1], [0, 0, 1, 1], [], []>} : vector<16x64xbf16>, vector<64x128xbf16>, vector<16x128xf32> -> vector<16x128xf32>
    %46 = arith.addf %18, %45 : vector<16x128xf32>
    %47 = vector.extract_strided_slice %11 {offsets = [0, 64], sizes = [16, 64], strides = [1, 1]} : vector<16x384xf32> to vector<16x64xf32>
    %48 = vector.shape_cast %47 : vector<16x64xf32> to vector<2x8x64xf32>
    %49 = vector.extract_strided_slice %11 {offsets = [0, 192], sizes = [16, 64], strides = [1, 1]} : vector<16x384xf32> to vector<16x64xf32>
    %50 = vector.shape_cast %49 : vector<16x64xf32> to vector<2x8x64xf32>
    %51 = vector.extract_strided_slice %11 {offsets = [0, 320], sizes = [16, 64], strides = [1, 1]} : vector<16x384xf32> to vector<16x64xf32>
    %52 = vector.shape_cast %51 : vector<16x64xf32> to vector<2x8x64xf32>
    %53 = arith.truncf %48 : vector<2x8x64xf32> to vector<2x8x64xbf16>
    %54 = arith.truncf %50 : vector<2x8x64xf32> to vector<2x8x64xbf16>
    "tpu.trace_start"() <{level = 10 : i32, message = "bqd,bkd->bqk"}> : () -> ()
    %cst_19 = arith.constant dense<0.000000e+00> : vector<2x8x8xf32>
    %55 = tpu.matmul %53, %54, %cst_19 {dimension_numbers = #tpu.dot_dimension_numbers<[2], [2], [1], [1], [0, 0, 0, 1, 1, 1], [0], [0]>} : vector<2x8x64xbf16>, vector<2x8x64xbf16>, vector<2x8x8xf32> -> vector<2x8x8xf32>
    "tpu.trace_stop"() : () -> ()
    %56 = arith.addf %55, %15 : vector<2x8x8xf32>
    %cst_20 = arith.constant dense<0xFF800000> : vector<2x8xf32>
    %57 = vector.multi_reduction <maximumf>, %56, %cst_20 [2] : vector<2x8x8xf32> to vector<2x8xf32>
    %58 = vector.shape_cast %57 : vector<2x8xf32> to vector<2x8x1xf32>
    %59 = vector.broadcast %58 : vector<2x8x1xf32> to vector<2x8x8xf32>
    %60 = arith.subf %56, %59 : vector<2x8x8xf32>
    %61 = math.exp %60 : vector<2x8x8xf32>
    %cst_21 = arith.constant dense<0.000000e+00> : vector<2x8xf32>
    %62 = vector.multi_reduction <add>, %61, %cst_21 [2] : vector<2x8x8xf32> to vector<2x8xf32>
    %63 = vector.shape_cast %62 : vector<2x8xf32> to vector<2x8x1xf32>
    %64 = tpu.reciprocal %63 {approx = true} : vector<2x8x1xf32> -> vector<2x8x1xf32>
    %65 = vector.broadcast %64 : vector<2x8x1xf32> to vector<2x8x8xf32>
    %66 = arith.mulf %61, %65 : vector<2x8x8xf32>
    %67 = arith.truncf %66 : vector<2x8x8xf32> to vector<2x8x8xbf16>
    %68 = arith.truncf %52 : vector<2x8x64xf32> to vector<2x8x64xbf16>
    "tpu.trace_start"() <{level = 10 : i32, message = "bqk,bkd->bqd"}> : () -> ()
    %cst_22 = arith.constant dense<0.000000e+00> : vector<2x8x64xf32>
    %69 = tpu.matmul %67, %68, %cst_22 {dimension_numbers = #tpu.dot_dimension_numbers<[2], [1], [1], [2], [0, 0, 0, 1, 1, 2], [0], [0]>} : vector<2x8x8xbf16>, vector<2x8x64xbf16>, vector<2x8x64xf32> -> vector<2x8x64xf32>
    "tpu.trace_stop"() : () -> ()
    %70 = vector.shape_cast %69 : vector<2x8x64xf32> to vector<16x64xf32>
    %71 = arith.truncf %70 : vector<16x64xf32> to vector<16x64xbf16>
    %72 = vector.extract_strided_slice %17 {offsets = [64, 0], sizes = [64, 128], strides = [1, 1]} : vector<128x128xbf16> to vector<64x128xbf16>
    %cst_23 = arith.constant dense<0.000000e+00> : vector<16x128xf32>
    %73 = tpu.matmul %71, %72, %cst_23 {dimension_numbers = #tpu.dot_dimension_numbers<[1], [0], [0], [1], [0, 0, 1, 1], [], []>} : vector<16x64xbf16>, vector<64x128xbf16>, vector<16x128xf32> -> vector<16x128xf32>
    %74 = arith.addf %46, %73 : vector<16x128xf32>
    %75 = arith.addf %4, %74 : vector<16x128xf32>
    %c0_24 = arith.constant 0 : index
    %c0_25 = arith.constant 0 : index
    %c0_26 = arith.constant 0 : index
    %76 = vector.load %arg8[%c0_24, %c0_25, %c0_26] : memref<1x1x128xf32, #tpu.memory_space<vmem>>, vector<1x1x128xf32>
    %77 = vector.shape_cast %76 : vector<1x1x128xf32> to vector<1x128xf32>
    %78 = vector.broadcast %77 : vector<1x128xf32> to vector<16x128xf32>
    %79 = arith.addf %75, %78 : vector<16x128xf32>
    %c0_27 = arith.constant 0 : index
    %c0_28 = arith.constant 0 : index
    %c0_29 = arith.constant 0 : index
    %80 = vector.load %arg9[%c0_27, %c0_28, %c0_29] : memref<1x1x128xf32, #tpu.memory_space<vmem>>, vector<1x1x128xf32>
    %81 = vector.shape_cast %80 : vector<1x1x128xf32> to vector<1x128xf32>
    %c0_30 = arith.constant 0 : index
    %c0_31 = arith.constant 0 : index
    %c0_32 = arith.constant 0 : index
    %82 = vector.load %arg10[%c0_30, %c0_31, %c0_32] : memref<1x1x128xf32, #tpu.memory_space<vmem>>, vector<1x1x128xf32>
    %83 = vector.shape_cast %82 : vector<1x1x128xf32> to vector<1x128xf32>
    %cst_33 = arith.constant dense<0.000000e+00> : vector<16xf32>
    %84 = vector.multi_reduction <add>, %79, %cst_33 [1] : vector<16x128xf32> to vector<16xf32>
    %85 = vector.shape_cast %84 : vector<16xf32> to vector<16x1xf32>
    %cst_34 = arith.constant 1.280000e+02 : f32
    %86 = vector.broadcast %cst_34 : f32 to vector<16x1xf32>
    %87 = arith.divf %85, %86 : vector<16x1xf32>
    %88 = vector.broadcast %87 : vector<16x1xf32> to vector<16x128xf32>
    %89 = arith.subf %79, %88 : vector<16x128xf32>
    %90 = arith.mulf %89, %89 : vector<16x128xf32>
    %cst_35 = arith.constant dense<0.000000e+00> : vector<16xf32>
    %91 = vector.multi_reduction <add>, %90, %cst_35 [1] : vector<16x128xf32> to vector<16xf32>
    %92 = vector.shape_cast %91 : vector<16xf32> to vector<16x1xf32>
    %cst_36 = arith.constant 1.280000e+02 : f32
    %93 = vector.broadcast %cst_36 : f32 to vector<16x1xf32>
    %94 = arith.divf %92, %93 : vector<16x1xf32>
    %cst_37 = arith.constant 9.99999996E-13 : f32
    %95 = vector.broadcast %cst_37 : f32 to vector<16x1xf32>
    %96 = arith.addf %94, %95 : vector<16x1xf32>
    %97 = math.rsqrt %96 : vector<16x1xf32>
    %98 = vector.broadcast %97 : vector<16x1xf32> to vector<16x128xf32>
    %99 = arith.mulf %89, %98 : vector<16x128xf32>
    %100 = vector.broadcast %81 : vector<1x128xf32> to vector<16x128xf32>
    %101 = arith.mulf %99, %100 : vector<16x128xf32>
    %102 = vector.broadcast %83 : vector<1x128xf32> to vector<16x128xf32>
    %103 = arith.addf %101, %102 : vector<16x128xf32>
    %104 = arith.truncf %103 : vector<16x128xf32> to vector<16x128xbf16>
    %c0_38 = arith.constant 0 : index
    %c0_39 = arith.constant 0 : index
    %c0_40 = arith.constant 0 : index
    %105 = vector.load %arg11[%c0_38, %c0_39, %c0_40] : memref<1x128x256xbf16, #tpu.memory_space<vmem>>, vector<1x128x256xbf16>
    %106 = vector.shape_cast %105 : vector<1x128x256xbf16> to vector<128x256xbf16>
    %cst_41 = arith.constant dense<0.000000e+00> : vector<16x256xf32>
    %107 = tpu.matmul %104, %106, %cst_41 {dimension_numbers = #tpu.dot_dimension_numbers<[1], [0], [0], [1], [0, 0, 1, 1], [], []>} : vector<16x128xbf16>, vector<128x256xbf16>, vector<16x256xf32> -> vector<16x256xf32>
    %c0_42 = arith.constant 0 : index
    %c0_43 = arith.constant 0 : index
    %c0_44 = arith.constant 0 : index
    %108 = vector.load %arg12[%c0_42, %c0_43, %c0_44] : memref<1x1x256xf32, #tpu.memory_space<vmem>>, vector<1x1x256xf32>
    %109 = vector.shape_cast %108 : vector<1x1x256xf32> to vector<1x256xf32>
    %110 = vector.broadcast %109 : vector<1x256xf32> to vector<16x256xf32>
    %111 = arith.addf %107, %110 : vector<16x256xf32>
    %cst_45 = arith.constant 5.000000e-01 : f32
    %112 = vector.broadcast %cst_45 : f32 to vector<16x256xf32>
    %113 = arith.mulf %112, %111 : vector<16x256xf32>
    %cst_46 = arith.constant 4.471500e-02 : f32
    %114 = vector.broadcast %cst_46 : f32 to vector<16x256xf32>
    %115 = arith.mulf %114, %111 : vector<16x256xf32>
    %116 = arith.mulf %115, %111 : vector<16x256xf32>
    %117 = arith.mulf %116, %111 : vector<16x256xf32>
    %118 = arith.addf %111, %117 : vector<16x256xf32>
    %cst_47 = arith.constant 0.797884583 : f32
    %119 = vector.broadcast %cst_47 : f32 to vector<16x256xf32>
    %120 = arith.mulf %119, %118 : vector<16x256xf32>
    %121 = math.tanh %120 : vector<16x256xf32>
    %cst_48 = arith.constant 1.000000e+00 : f32
    %122 = vector.broadcast %cst_48 : f32 to vector<16x256xf32>
    %123 = arith.addf %122, %121 : vector<16x256xf32>
    %124 = arith.mulf %113, %123 : vector<16x256xf32>
    %125 = arith.truncf %124 : vector<16x256xf32> to vector<16x256xbf16>
    %c0_49 = arith.constant 0 : index
    %c0_50 = arith.constant 0 : index
    %c0_51 = arith.constant 0 : index
    %126 = vector.load %arg13[%c0_49, %c0_50, %c0_51] : memref<1x256x128xbf16, #tpu.memory_space<vmem>>, vector<1x256x128xbf16>
    %127 = vector.shape_cast %126 : vector<1x256x128xbf16> to vector<256x128xbf16>
    %cst_52 = arith.constant dense<0.000000e+00> : vector<16x128xf32>
    %128 = tpu.matmul %125, %127, %cst_52 {dimension_numbers = #tpu.dot_dimension_numbers<[1], [0], [0], [1], [0, 0, 1, 1], [], []>} : vector<16x256xbf16>, vector<256x128xbf16>, vector<16x128xf32> -> vector<16x128xf32>
    %c0_53 = arith.constant 0 : index
    %c0_54 = arith.constant 0 : index
    %c0_55 = arith.constant 0 : index
    %129 = vector.load %arg14[%c0_53, %c0_54, %c0_55] : memref<1x1x128xf32, #tpu.memory_space<vmem>>, vector<1x1x128xf32>
    %130 = vector.shape_cast %129 : vector<1x1x128xf32> to vector<1x128xf32>
    %131 = vector.broadcast %130 : vector<1x128xf32> to vector<16x128xf32>
    %132 = arith.addf %128, %131 : vector<16x128xf32>
    %133 = arith.addf %103, %132 : vector<16x128xf32>
    %c0_56 = arith.constant 0 : index
    %c0_57 = arith.constant 0 : index
    %c0_58 = arith.constant 0 : index
    %134 = vector.load %arg15[%c0_56, %c0_57, %c0_58] : memref<1x1x128xf32, #tpu.memory_space<vmem>>, vector<1x1x128xf32>
    %135 = vector.shape_cast %134 : vector<1x1x128xf32> to vector<1x128xf32>
    %c0_59 = arith.constant 0 : index
    %c0_60 = arith.constant 0 : index
    %c0_61 = arith.constant 0 : index
    %136 = vector.load %arg16[%c0_59, %c0_60, %c0_61] : memref<1x1x128xf32, #tpu.memory_space<vmem>>, vector<1x1x128xf32>
    %137 = vector.shape_cast %136 : vector<1x1x128xf32> to vector<1x128xf32>
    %cst_62 = arith.constant dense<0.000000e+00> : vector<16xf32>
    %138 = vector.multi_reduction <add>, %133, %cst_62 [1] : vector<16x128xf32> to vector<16xf32>
    %139 = vector.shape_cast %138 : vector<16xf32> to vector<16x1xf32>
    %cst_63 = arith.constant 1.280000e+02 : f32
    %140 = vector.broadcast %cst_63 : f32 to vector<16x1xf32>
    %141 = arith.divf %139, %140 : vector<16x1xf32>
    %142 = vector.broadcast %141 : vector<16x1xf32> to vector<16x128xf32>
    %143 = arith.subf %133, %142 : vector<16x128xf32>
    %144 = arith.mulf %143, %143 : vector<16x128xf32>
    %cst_64 = arith.constant dense<0.000000e+00> : vector<16xf32>
    %145 = vector.multi_reduction <add>, %144, %cst_64 [1] : vector<16x128xf32> to vector<16xf32>
    %146 = vector.shape_cast %145 : vector<16xf32> to vector<16x1xf32>
    %cst_65 = arith.constant 1.280000e+02 : f32
    %147 = vector.broadcast %cst_65 : f32 to vector<16x1xf32>
    %148 = arith.divf %146, %147 : vector<16x1xf32>
    %cst_66 = arith.constant 9.99999996E-13 : f32
    %149 = vector.broadcast %cst_66 : f32 to vector<16x1xf32>
    %150 = arith.addf %148, %149 : vector<16x1xf32>
    %151 = math.rsqrt %150 : vector<16x1xf32>
    %152 = vector.broadcast %151 : vector<16x1xf32> to vector<16x128xf32>
    %153 = arith.mulf %143, %152 : vector<16x128xf32>
    %154 = vector.broadcast %135 : vector<1x128xf32> to vector<16x128xf32>
    %155 = arith.mulf %153, %154 : vector<16x128xf32>
    %156 = vector.broadcast %137 : vector<1x128xf32> to vector<16x128xf32>
    %157 = arith.addf %155, %156 : vector<16x128xf32>
    %158 = arith.truncf %157 : vector<16x128xf32> to vector<16x128xbf16>
    %c0_67 = arith.constant 0 : index
    %c0_68 = arith.constant 0 : index
    %159 = vector.load %arg24[%c0_67, %c0_68] : memref<16x128xbf16, #tpu.memory_space<vmem>>, vector<16x128xbf16>
    tpu.vector_store %arg24[%c0_67, %c0_68], %158 {strides = array<i32>} : memref<16x128xbf16, #tpu.memory_space<vmem>>, vector<16x128xbf16>,
    %c1_i32 = arith.constant 1 : i32
    %160 = arith.cmpi eq, %arg0, %c1_i32 : i32
    %161 = arith.extui %160 : i1 to i32
    %c0_i32_69 = arith.constant 0 : i32
    %162 = arith.cmpi ne, %161, %c0_i32_69 : i32
    scf.if %162 {
      %163 = vector.shape_cast %157 : vector<16x128xf32> to vector<2x8x128xf32>
      %164 = vector.extract_strided_slice %163 {offsets = [0, 0, 0], sizes = [2, 1, 128], strides = [1, 1, 1]} : vector<2x8x128xf32> to vector<2x1x128xf32>
      %165 = vector.shape_cast %164 : vector<2x1x128xf32> to vector<2x128xf32>
      %166 = arith.truncf %165 : vector<2x128xf32> to vector<2x128xbf16>
      %c0_70 = arith.constant 0 : index
      %c0_71 = arith.constant 0 : index
      %167 = vector.load %arg17[%c0_70, %c0_71] : memref<128x128xbf16, #tpu.memory_space<vmem>>, vector<128x128xbf16>
      %cst_72 = arith.constant dense<0.000000e+00> : vector<2x128xf32>
      %168 = tpu.matmul %166, %167, %cst_72 {dimension_numbers = #tpu.dot_dimension_numbers<[1], [0], [0], [1], [0, 0, 1, 1], [], []>} : vector<2x128xbf16>, vector<128x128xbf16>, vector<2x128xf32> -> vector<2x128xf32>
      %c0_73 = arith.constant 0 : index
      %c0_74 = arith.constant 0 : index
      %169 = vector.load %arg18[%c0_73, %c0_74] : memref<1x128xf32, #tpu.memory_space<vmem>>, vector<1x128xf32>
      %170 = vector.broadcast %169 : vector<1x128xf32> to vector<2x128xf32>
      %171 = arith.addf %168, %170 : vector<2x128xf32>
      %172 = math.tanh %171 : vector<2x128xf32>
      %173 = arith.truncf %172 : vector<2x128xf32> to vector<2x128xbf16>
      %c0_75 = arith.constant 0 : index
      %c0_76 = arith.constant 0 : index
      %174 = vector.load %arg19[%c0_75, %c0_76] : memref<128x128xbf16, #tpu.memory_space<vmem>>, vector<128x128xbf16>
      %cst_77 = arith.constant dense<0.000000e+00> : vector<2x128xf32>
      %175 = tpu.matmul %173, %174, %cst_77 {dimension_numbers = #tpu.dot_dimension_numbers<[1], [0], [0], [1], [0, 0, 1, 1], [], []>} : vector<2x128xbf16>, vector<128x128xbf16>, vector<2x128xf32> -> vector<2x128xf32>
      %c0_78 = arith.constant 0 : index
      %c0_79 = arith.constant 0 : index
      %176 = vector.load %arg20[%c0_78, %c0_79] : memref<1x128xf32, #tpu.memory_space<vmem>>, vector<1x128xf32>
      %177 = vector.broadcast %176 : vector<1x128xf32> to vector<2x128xf32>
      %178 = arith.addf %175, %177 : vector<2x128xf32>
      %cst_80 = arith.constant 0.000000e+00 : f32
      %179 = vector.broadcast %cst_80 : f32 to vector<2x128xf32>
      %180 = arith.maximumf %178, %179 : vector<2x128xf32>
      %c0_81 = arith.constant 0 : index
      %c0_82 = arith.constant 0 : index
      %181 = vector.load %arg21[%c0_81, %c0_82] : memref<1x128xbf16, #tpu.memory_space<vmem>>, vector<1x128xbf16>
      %182 = arith.extf %181 : vector<1x128xbf16> to vector<1x128xf32>
      %183 = vector.broadcast %182 : vector<1x128xf32> to vector<2x128xf32>
      %184 = arith.mulf %180, %183 : vector<2x128xf32>
      %cst_83 = arith.constant dense<0.000000e+00> : vector<2xf32>
      %185 = vector.multi_reduction <add>, %184, %cst_83 [1] : vector<2x128xf32> to vector<2xf32>
      %186 = vector.shape_cast %185 : vector<2xf32> to vector<2x1xf32>
      %c0_84 = arith.constant 0 : index
      %c0_85 = arith.constant 0 : index
      %187 = vector.load %arg22[%c0_84, %c0_85] : memref<1x1xf32, #tpu.memory_space<vmem>>, vector<1x1xf32>
      %188 = vector.broadcast %187 : vector<1x1xf32> to vector<2x1xf32>
      %189 = arith.addf %186, %188 : vector<2x1xf32>
      %cst_86 = arith.constant 0.000000e+00 : f32
      %190 = vector.broadcast %cst_86 : f32 to vector<2x1xf32>
      %191 = arith.subf %190, %189 : vector<2x1xf32>
      %192 = math.exp %191 : vector<2x1xf32>
      %cst_87 = arith.constant 1.000000e+00 : f32
      %193 = vector.broadcast %cst_87 : f32 to vector<2x1xf32>
      %194 = arith.addf %193, %192 : vector<2x1xf32>
      %cst_88 = arith.constant 1.000000e+00 : f32
      %195 = vector.broadcast %cst_88 : f32 to vector<2x1xf32>
      %196 = arith.divf %195, %194 : vector<2x1xf32>
      %c0_89 = arith.constant 0 : index
      %c0_90 = arith.constant 0 : index
      %197 = vector.load %arg23[%c0_89, %c0_90] : memref<2x1xf32, #tpu.memory_space<vmem>>, vector<2x1xf32>
      tpu.vector_store %arg23[%c0_89, %c0_90], %196 {strides = array<i32>} : memref<2x1xf32, #tpu.memory_space<vmem>>, vector<2x1xf32>,
    } else {
    }
    return
  }
  func.func @transform_0(%arg0: i32) -> (i32, i32) {
    %c0_i32 = arith.constant 0 : i32
    %c0_i32_0 = arith.constant 0 : i32
    %c0_i32_1 = arith.constant 0 : i32
    return %c0_i32, %c0_i32_0 : i32, i32
  }
  func.func @transform_1(%arg0: i32) -> (i32, i32) {
    %c0_i32 = arith.constant 0 : i32
    %c0_i32_0 = arith.constant 0 : i32
    %c0_i32_1 = arith.constant 0 : i32
    return %c0_i32, %c0_i32_0 : i32, i32
  }
  func.func @transform_2(%arg0: i32) -> (i32, i32) {
    %c0_i32 = arith.constant 0 : i32
    %c0_i32_0 = arith.constant 0 : i32
    %c0_i32_1 = arith.constant 0 : i32
    return %c0_i32, %c0_i32_0 : i32, i32
  }
  func.func @transform_3(%arg0: i32) -> (i32, i32) {
    %c0_i32 = arith.constant 0 : i32
    %c0_i32_0 = arith.constant 0 : i32
    %c0_i32_1 = arith.constant 0 : i32
    return %c0_i32, %c0_i32_0 : i32, i32
  }
  func.func @transform_4(%arg0: i32) -> (i32, i32, i32) {
    %c0_i32 = arith.constant 0 : i32
    %c0_i32_0 = arith.constant 0 : i32
    %c0_i32_1 = arith.constant 0 : i32
    return %arg0, %c0_i32, %c0_i32_0 : i32, i32, i32
  }
  func.func @transform_5(%arg0: i32) -> (i32, i32, i32) {
    %c0_i32 = arith.constant 0 : i32
    %c0_i32_0 = arith.constant 0 : i32
    %c0_i32_1 = arith.constant 0 : i32
    return %arg0, %c0_i32, %c0_i32_0 : i32, i32, i32
  }
  func.func @transform_6(%arg0: i32) -> (i32, i32, i32) {
    %c0_i32 = arith.constant 0 : i32
    %c0_i32_0 = arith.constant 0 : i32
    %c0_i32_1 = arith.constant 0 : i32
    return %arg0, %c0_i32, %c0_i32_0 : i32, i32, i32
  }
  func.func @transform_7(%arg0: i32) -> (i32, i32, i32) {
    %c0_i32 = arith.constant 0 : i32
    %c0_i32_0 = arith.constant 0 : i32
    %c0_i32_1 = arith.constant 0 : i32
    return %arg0, %c0_i32, %c0_i32_0 : i32, i32, i32
  }
  func.func @transform_8(%arg0: i32) -> (i32, i32, i32) {
    %c0_i32 = arith.constant 0 : i32
    %c0_i32_0 = arith.constant 0 : i32
    %c0_i32_1 = arith.constant 0 : i32
    return %arg0, %c0_i32, %c0_i32_0 : i32, i32, i32
  }
  func.func @transform_9(%arg0: i32) -> (i32, i32, i32) {
    %c0_i32 = arith.constant 0 : i32
    %c0_i32_0 = arith.constant 0 : i32
    %c0_i32_1 = arith.constant 0 : i32
    return %arg0, %c0_i32, %c0_i32_0 : i32, i32, i32
  }
  func.func @transform_10(%arg0: i32) -> (i32, i32, i32) {
    %c0_i32 = arith.constant 0 : i32
    %c0_i32_0 = arith.constant 0 : i32
    %c0_i32_1 = arith.constant 0 : i32
    return %arg0, %c0_i32, %c0_i32_0 : i32, i32, i32
  }
  func.func @transform_11(%arg0: i32) -> (i32, i32, i32) {
    %c0_i32 = arith.constant 0 : i32
    %c0_i32_0 = arith.constant 0 : i32
    %c0_i32_1 = arith.constant 0 : i32
    return %arg0, %c0_i32, %c0_i32_0 : i32, i32, i32
  }
  func.func @transform_12(%arg0: i32) -> (i32, i32, i32) {
    %c0_i32 = arith.constant 0 : i32
    %c0_i32_0 = arith.constant 0 : i32
    %c0_i32_1 = arith.constant 0 : i32
    return %arg0, %c0_i32, %c0_i32_0 : i32, i32, i32
  }
  func.func @transform_13(%arg0: i32) -> (i32, i32, i32) {
    %c0_i32 = arith.constant 0 : i32
    %c0_i32_0 = arith.constant 0 : i32
    %c0_i32_1 = arith.constant 0 : i32
    return %arg0, %c0_i32, %c0_i32_0 : i32, i32, i32
  }
  func.func @transform_14(%arg0: i32) -> (i32, i32, i32) {
    %c0_i32 = arith.constant 0 : i32
    %c0_i32_0 = arith.constant 0 : i32
    %c0_i32_1 = arith.constant 0 : i32
    return %arg0, %c0_i32, %c0_i32_0 : i32, i32, i32
  }
  func.func @transform_15(%arg0: i32) -> (i32, i32, i32) {
    %c0_i32 = arith.constant 0 : i32
    %c0_i32_0 = arith.constant 0 : i32
    %c0_i32_1 = arith.constant 0 : i32
    return %arg0, %c0_i32, %c0_i32_0 : i32, i32, i32
  }
  func.func @transform_16(%arg0: i32) -> (i32, i32) {
    %c0_i32 = arith.constant 0 : i32
    %c0_i32_0 = arith.constant 0 : i32
    %c0_i32_1 = arith.constant 0 : i32
    return %c0_i32, %c0_i32_0 : i32, i32
  }
  func.func @transform_17(%arg0: i32) -> (i32, i32) {
    %c0_i32 = arith.constant 0 : i32
    %c0_i32_0 = arith.constant 0 : i32
    %c0_i32_1 = arith.constant 0 : i32
    return %c0_i32, %c0_i32_0 : i32, i32
  }
  func.func @transform_18(%arg0: i32) -> (i32, i32) {
    %c0_i32 = arith.constant 0 : i32
    %c0_i32_0 = arith.constant 0 : i32
    %c0_i32_1 = arith.constant 0 : i32
    return %c0_i32, %c0_i32_0 : i32, i32
  }
  func.func @transform_19(%arg0: i32) -> (i32, i32) {
    %c0_i32 = arith.constant 0 : i32
    %c0_i32_0 = arith.constant 0 : i32
    %c0_i32_1 = arith.constant 0 : i32
    return %c0_i32, %c0_i32_0 : i32, i32
  }
  func.func @transform_20(%arg0: i32) -> (i32, i32) {
    %c0_i32 = arith.constant 0 : i32
    %c0_i32_0 = arith.constant 0 : i32
    %c0_i32_1 = arith.constant 0 : i32
    return %c0_i32, %c0_i32_0 : i32, i32
  }
  func.func @transform_21(%arg0: i32) -> (i32, i32) {
    %c0_i32 = arith.constant 0 : i32
    %c0_i32_0 = arith.constant 0 : i32
    %c0_i32_1 = arith.constant 0 : i32
    return %c0_i32, %c0_i32_0 : i32, i32
  }
  func.func @transform_22(%arg0: i32) -> (i32, i32) {
    %c0_i32 = arith.constant 0 : i32
    %c0_i32_0 = arith.constant 0 : i32
    %c0_i32_1 = arith.constant 0 : i32
    return %c0_i32, %c0_i32_0 : i32, i32
  }
}

</mosaic_0001>

<bundles_post_ra>
// kernel: forward.1
= control target key start
LH: loop header
LB: loop body
LE: loop exit
PB: predicated region body
PF: predicated region fallthrough
CT: control target
= control target key end

     0   :  { %s4925_s0 = inlined_call_operand.vmem [shape: f32[16,128], index: 0, kind: input, shape index: {}]   ;;  %s4926_s1 = inlined_call_operand.vmem [shape: f32[2,8], index: 1, kind: input, shape index: {}]   ;;  %s4927_s2 = inlined_call_operand.vmem [shape: f32[1,128], index: 2, kind: input, shape index: {}]   ;;  %s4928_s3 = inlined_call_operand.vmem [shape: f32[1,128], index: 3, kind: input, shape index: {}]   ;;  %s4929_s4 = inlined_call_operand.hbm [shape: bf16[2,128,384], index: 4, kind: input, shape index: {}]   ;;  %s4930_s5 = inlined_call_operand.hbm [shape: f32[2,1,384], index: 5, kind: input, shape index: {}]   ;;  %s4931_s6 = inlined_call_operand.hbm [shape: bf16[2,128,128], index: 6, kind: input, shape index: {}]   ;;  %s4932_s7 = inlined_call_operand.hbm [shape: f32[2,1,128], index: 7, kind: input, shape index: {}]   ;;  %s4933_s8 = inlined_call_operand.hbm [shape: f32[2,1,128], index: 8, kind: input, shape index: {}]   ;;  %s4934_s9 = inlined_call_operand.hbm [shape: f32[2,1,128], index: 9, kind: input, shape index: {}]   ;;  %s4935_s10 = inlined_call_operand.vmem [shape: bf16[2,128,256], index: 10, kind: input, shape index: {}]   ;;  %s4936_s11 = inlined_call_operand.hbm [shape: f32[2,1,256], index: 11, kind: input, shape index: {}]   ;;  %s4937_s12 = inlined_call_operand.hbm [shape: bf16[2,256,128], index: 12, kind: input, shape index: {}]   ;;  %s4938_s13 = inlined_call_operand.vmem [shape: f32[2,1,128], index: 13, kind: input, shape index: {}]   ;;  %s4939_s14 = inlined_call_operand.hbm [shape: f32[2,1,128], index: 14, kind: input, shape index: {}]   ;;  %s4940_s15 = inlined_call_operand.hbm [shape: f32[2,1,128], index: 15, kind: input, shape index: {}]   ;;  %s4941_s16 = inlined_call_operand.hbm [shape: bf16[128,128], index: 16, kind: input, shape index: {}]   ;;  %s4942_s17 = inlined_call_operand.vmem [shape: f32[1,128], index: 17, kind: input, shape index: {}]   ;;  %s4943_s18 = inlined_call_operand.hbm [shape: bf16[128,128], index: 18, kind: input, shape index: {}]   ;;  %s4944_s19 = inlined_call_operand.vmem [shape: f32[1,128], index: 19, kind: input, shape index: {}]   ;;  %s4945_s20 = inlined_call_operand.vmem [shape: bf16[1,128], index: 20, kind: input, shape index: {}]   ;;  %s4946_s21 = inlined_call_operand.<no memory space> [shape: f32[1,1], index: 21, kind: input, shape index: {}]   ;;  %s4947_s22 = inlined_call_operand.vmem [shape: f32[2,1], index: 22, kind: output, shape index: {}]  }
   0x1   :  { %4979 = sst [smem:[#allocation35_spill]] %s4925_s0  ;;  %v27_v0 = vstv %s4946_s21 }
   0x2   :  { %4980 = sst [smem:[#allocation36_spill]] %s4926_s1  ;;  %28 = vst [vmem:[#allocation3] sm:$0x1] %v27_v0 }
   0x3   :  { %4981 = sst [smem:[#allocation37_spill]] %s4927_s2 }
   0x4   :  { %4982 = sst [smem:[#allocation38_spill]] %s4928_s3 }
   0x5   :  { %4983 = sst [smem:[#allocation39_spill]] %s4929_s4 }
   0x6   :  { %4984 = sst [smem:[#allocation40_spill]] %s4930_s5 }
   0x7   :  { %4985 = sst [smem:[#allocation41_spill]] %s4931_s6 }
   0x8   :  { %4986 = sst [smem:[#allocation42_spill]] %s4932_s7 }
   0x9   :  { %4987 = sst [smem:[#allocation43_spill]] %s4934_s9 }
   0xa   :  { %4988 = sst [smem:[#allocation44_spill]] %s4935_s10 }
   0xb   :  { %4989 = sst [smem:[#allocation45_spill]] %s4938_s13 }
   0xc   :  { %4990 = sst [smem:[#allocation46_spill]] %s4941_s16 }
   0xd   :  { %4991 = sst [smem:[#allocation47_spill]] %s4942_s17 }
   0xe   :  { %4992 = sst [smem:[#allocation48_spill]] %s4944_s19 }
   0xf   :  { %4993 = sst [smem:[#allocation49_spill]] %s4945_s20 }
  0x10   :  { %4994 = sst [smem:[#allocation50_spill]] %s4947_s22 }
  0x11   :  { %29 = vsyncpa [#allocation5], 0 }
  0x12   :  { %31 = vsyncpa [#allocation5 + $0x1], 0 }
  0x13   :  { %32 = vsyncpa [#allocation7], 0 }
  0x14   :  { %34 = vsyncpa [#allocation7 + $0x1], 0 }
  0x15   :  { %35 = vsyncpa [#allocation10], 0 }
  0x16   :  { %37 = vsyncpa [#allocation10 + $0x1], 0 }
  0x17   :  { %38 = vsyncpa [#allocation13], 0 }
  0x18   :  { %40 = vsyncpa [#allocation13 + $0x1], 0 }
  0x19   :  { %41 = vsyncpa [#allocation16], 0 }
  0x1a   :  { %43 = vsyncpa [#allocation16 + $0x1], 0 }
  0x1b   :  { %44 = vsyncpa [#allocation19], 0 }
  0x1c   :  { %46 = vsyncpa [#allocation19 + $0x1], 0 }
  0x1d   :  { %47 = vsyncpa [#allocation22], 0  ;;  %s4168_s29 = smov 0   ;;  %s4170_s30 = smov 0  }
  0x1e   :  { %s4172_s4 = smov 0   ;;  %s4174_s21 = smov 0  }
  0x1f LB: > { %4995 = sst [smem:[#allocation31_spill]] %s4021_s4  ;;  %s4187_s0 = sadd.s32 4294967295, %s4025_s21   ;;  %s4025_s21 = sphi %s4174_s21, %s5054_s21   ;;  %s4021_s4 = sphi %s4172_s4, %s5056_s4   ;;  %s4017_s30 = sphi %s4170_s30, %s5058_s30   ;;  %s4013_s29 = sphi %s4168_s29, %s5057_s29  }
  0x20   : > { %4996 = sst [smem:[#allocation32_spill]] %s4187_s0  ;;  %s4190_s23 = sadd.s32 1, %s4025_s21  }
  0x21   : > { %4997 = sst [smem:[#allocation33_spill]] %s4190_s23  ;;  %s141_s1 = ssub.s32 %s4025_s21, %s4190_s23 }
  0x22   : > { %s144_s5 = sadd.s32 1, %s4021_s4  ;;  %p142_p0 = scmp.eq.s32.totalorder %s141_s1, 0 }
  0x23   : > { %p151_p1 = scmp.ne.s32.totalorder %s4021_s4, %s4017_s30  ;;  %p152_p2 = scmp.eq.s32.totalorder %s4025_s21, 0 }
  0x24   : > { %p157_p3 = scmp.ne.s32.totalorder %s4017_s30, %s4013_s29  ;;  %p4955_p5 = scmp.eq.s32.totalorder %s4187_s0, 0 }
  0x25   : > { %s4200_s24 = scalar_select %p142_p0, %s4021_s4, %s144_s5  }
  0x26   : > { %p4202_p4 = por %p152_p2, %p151_p1  ;;  %p3002_p6 = scmp.ge.s32.totalorder %s4025_s21, 1 }
  0x27   : > { %4998 = sst [smem:[#allocation34_spill]] %s4200_s24  ;;  %p601_p7 = scmp.lt.s32.totalorder %s4025_s21, 3 }
  0x28   : > { %p4211_p8 = por %p4955_p5, %p157_p3  ;;  %s4027_s2 = smov [#allocation20]  }
  0x29   : > { %p4216_p10 = pnand %p3002_p6, %p601_p7  ;;  %s625_s27 = sshll.u32 %s4027_s2, 4  ;;  %s626_s27 = int_to_ptr.vmem [resolvable:$true] %s625_s27 }
  0x2a   : > { %s5000_s25 = scalar_select %p4211_p8, 1, 0 }
  0x2b   : > { %s5001_s26 = scalar_select %p4216_p10, 1, 0 }
  0x2c   : > { %p3381_p11 = pneg %p4216_p10  ;;  %p3421_p13 = scmp.lt.s32.totalorder %s4025_s21, 2 }
  0x2d   : > { %s4230_s28 = sand.u32 1, %s4021_s4   ;;  %s4233_s29 = sand.u32 1, %s4025_s21  }
  0x2e   : > { %p4224_p12 = pnand %p3381_p11, %p4955_p5  ;;  %p4237_p0 = pnand %p3421_p13, %p4202_p4 }
  0x2f   : > { %s5004_s16 = sld [smem:[#allocation46_spill]] }
  0x30   : > { %s5002_s3 = scalar_select %p4224_p12, 1, 0 }
  0x31   : > { %s5003_s1 = scalar_select %p4237_p0, 1, 0 }
  0x32   : > { %p4965_p2 = pneg %p4224_p12 }
  0x35   : > { %s3607_s24 = scalar_lea.hbm %s5004_s16, 1024 }
  0x36   : > { %p3608_p1 = scmp.ne.s32.totalorder %s5004_s16, %s3607_s24  ;;  %p3614_p4 = scmp.lt.u32.totalorder %s3607_s24, %s5004_s16 }
  0x38   : > { %p3610_p3 = pnand %p4965_p2, %p3608_p1 }
  0x3a   : > { %p3611_p6 = pneg %p3610_p3 }
  0x3c   : > { %p3616_p7 = pnand %p3614_p4, %p3611_p6 }
  0x3e   : > { %3619 = shalt.err (!%p3616_p7)
}
  0x3f   : > { %s3620_s19 = scalar_lea.vmem %s626_s27, 1024  ;;  %p3628_p5 = scmp.lt.s32.totalorder %s626_s27, %s626_s27 }
  0x40   : > { %p3621_p11 = scmp.ne.s32.totalorder %s626_s27, %s3620_s19  ;;  %p3629_p8 = scmp.lt.s32.totalorder %s3620_s19, %s3620_s19 }
  0x42   : > { %p3623_p13 = pnand %p3621_p11, %p4965_p2  ;;  %p3630_p10 = por %p3629_p8, %p3628_p5 }
  0x44   : > { %p3624_p9 = pneg %p3623_p13 }
  0x46   : > { %p3631_p0 = pnand %p3630_p10, %p3624_p9 }
  0x48   : > { %3634 = shalt.err (!%p3631_p0)
}
  0x49   : > { %s4961_s22 = smov 64   ;;  %s4963_s4 = smov 4  }
  0x4a   : > { %3384 = dma.hbm_to_vmem [thread:$0]  (!%p4224_p12), %s5004_s16, 1024, %s626_s27, [#allocation19], %s4961_s22, %s4961_s22, %s4963_s4  }
  0x4b   : > { %s3349_s19 = smul.u32 3, %s4230_s28  ;;  %s4269_s2 = sshll.u32 %s4025_s21, 4 }
  0x4c   : > { %s3350_s5 = smul.u32 48, %s4025_s21  ;;  %s5005_s17 = sld [smem:[#allocation40_spill]] }
  0x4d   : > { %s689_s13 = scalar_lea.vmem [#allocation6], %s3349_s19  ;;  %s5006_s7 = sld [smem:[#allocation42_spill]] }
  0x4e   : > { %s697_s0 = sshll.u32 %s689_s13, 4  ;;  %s4971_s22 = scalar_lea.sflag [#allocation7], %s4233_s29  ;;  %s4276_s0 = int_to_ptr.vmem [resolvable:$true] %s697_s0 }
  0x4f   : > { %p5007_p8 = scmp.ne.s32.totalorder %s5003_s1, 0 }
  0x51   : > { %p4289_p9 = pneg %p5007_p8 }
  0x52   : > { %s4274_s10 = scalar_lea.hbm %s5005_s17, %s3350_s5  ;;  %s3640_s5 = scalar_lea.hbm %s5005_s17, 96 }
  0x53   : > { %s4282_s24 = scalar_lea.hbm %s5006_s7, %s4269_s2  ;;  %s3635_s4 = scalar_lea.hbm %s4274_s10, 48 }
  0x54   : > { %p3636_p5 = scmp.ne.s32.totalorder %s4274_s10, %s3635_s4  ;;  %p3641_p1 = scmp.lt.u32.totalorder %s4274_s10, %s5005_s17 }
  0x55   : > { %s5008_s20 = scalar_select %p4289_p9, 1, 0 }
  0x56   : > { %p3638_p10 = pnand %p4289_p9, %p3636_p5  ;;  %p3642_p3 = scmp.lt.u32.totalorder %s3640_s5, %s3635_s4 }
  0x57   : > { %p3644_p4 = scmp.lt.u32.totalorder %s3635_s4, %s4274_s10 }
  0x58   : > { %p3639_p0 = pneg %p3638_p10  ;;  %p3643_p6 = por %p3642_p3, %p3641_p1 }
  0x5a   : > { %p3645_p7 = por %p3644_p4, %p3643_p6 }
  0x5c   : > { %p3646_p11 = pnand %p3645_p7, %p3639_p0 }
  0x5e   : > { %3649 = shalt.err (!%p3646_p11)
}
  0x5f   : > { %s3650_s27 = scalar_lea.vmem %s4276_s0, 48  ;;  %s4030_s13 = smov [#allocation6]  }
  0x60   : > { %p3651_p13 = scmp.ne.s32.totalorder %s4276_s0, %s3650_s27  ;;  %s3655_s19 = sshll.u32 %s4030_s13, 4  ;;  %s3656_s19 = int_to_ptr.vmem [resolvable:$false] %s3655_s19 }
  0x61   : > { %s3657_s6 = scalar_lea.vmem %s3656_s19, 96  ;;  %p3658_p2 = scmp.lt.s32.totalorder %s4276_s0, %s3656_s19 }
  0x62   : > { %p3653_p5 = pnand %p3651_p13, %p4289_p9  ;;  %p3659_p12 = scmp.lt.s32.totalorder %s3657_s6, %s3650_s27 }
  0x64   : > { %p3654_p10 = pneg %p3653_p5  ;;  %p3660_p1 = por %p3659_p12, %p3658_p2 }
  0x66   : > { %p3661_p3 = pnand %p3660_p1, %p3654_p10 }
  0x68   : > { %3664 = shalt.err (!%p3661_p3)
}
  0x69   : > { %3394 = dma.hbm_to_vmem [thread:$0]  (!%p5007_p8), %s4274_s10, 48, %s4276_s0, %s4971_s22  }
  0x6a   : > { %s728_s4 = scalar_lea.vmem [#allocation9], %s4230_s28  ;;  %s4970_s23 = scalar_lea.sflag [#allocation10], %s4233_s29 }
  0x6b   : > { %s735_s5 = sshll.u32 %s728_s4, 4  ;;  %s3665_s27 = scalar_lea.hbm %s4282_s24, 16  ;;  %s736_s5 = int_to_ptr.vmem [resolvable:$true] %s735_s5 }
  0x6c   : > { %p3666_p12 = scmp.ne.s32.totalorder %s4282_s24, %s3665_s27  ;;  %s3670_s6 = scalar_lea.hbm %s5006_s7, 32 }
  0x6d   : > { %p3671_p6 = scmp.lt.u32.totalorder %s4282_s24, %s5006_s7  ;;  %p3672_p4 = scmp.lt.u32.totalorder %s3670_s6, %s3665_s27 }
  0x6e   : > { %p3668_p2 = pnand %p3666_p12, %p4289_p9  ;;  %p3674_p11 = scmp.lt.u32.totalorder %s3665_s27, %s4282_s24 }
  0x6f   : > { %p3673_p7 = por %p3672_p4, %p3671_p6 }
  0x70   : > { %p3669_p0 = pneg %p3668_p2 }
  0x71   : > { %p3675_p13 = por %p3674_p11, %p3673_p7 }
  0x73   : > { %p3676_p5 = pnand %p3675_p13, %p3669_p0 }
  0x75   : > { %3679 = shalt.err (!%p3676_p5)
}
  0x76   : > { %s3680_s10 = scalar_lea.vmem %s736_s5, 16  ;;  %s4031_s0 = smov [#allocation9]  }
  0x77   : > { %p3681_p10 = scmp.ne.s32.totalorder %s736_s5, %s3680_s10  ;;  %s3685_s4 = sshll.u32 %s4031_s0, 4  ;;  %s3686_s4 = int_to_ptr.vmem [resolvable:$false] %s3685_s4 }
  0x78   : > { %s3687_s13 = scalar_lea.vmem %s3686_s4, 32  ;;  %p3688_p12 = scmp.lt.s32.totalorder %s736_s5, %s3686_s4 }
  0x79   : > { %p3683_p1 = pnand %p3681_p10, %p4289_p9  ;;  %p3689_p2 = scmp.lt.s32.totalorder %s3687_s13, %s3680_s10 }
  0x7b   : > { %p3684_p3 = pneg %p3683_p1  ;;  %p3690_p8 = por %p3689_p2, %p3688_p12 }
  0x7d   : > { %p3691_p4 = pnand %p3690_p8, %p3684_p3 }
  0x7f   : > { %3694 = shalt.err (!%p3691_p4)
}
  0x80   : > { %p5009_p6 = scmp.ne.s32.totalorder %s5003_s1, 0  ;;  %s5010_s9 = sld [smem:[#allocation43_spill]] }
  0x81   : > { %s762_s19 = scalar_lea.vmem [#allocation12], %s4230_s28  ;;  %s4972_s10 = scalar_lea.sflag [#allocation13], %s4233_s29 }
  0x82   : > { %3400 = dma.hbm_to_vmem [thread:$0]  (!%p5009_p6), %s4282_s24, 16, %s736_s5, %s4970_s23  }
  0x83   : > { %s769_s6 = sshll.u32 %s762_s19, 4  ;;  %s770_s6 = int_to_ptr.vmem [resolvable:$true] %s769_s6 }
  0x86   : > { %s4339_s27 = scalar_lea.hbm %s5010_s9, %s4269_s2  ;;  %s3700_s5 = scalar_lea.hbm %s5010_s9, 32 }
  0x87   : > { %s3695_s0 = scalar_lea.hbm %s4339_s27, 16  ;;  %p3701_p11 = scmp.lt.u32.totalorder %s4339_s27, %s5010_s9 }
  0x88   : > { %p3696_p8 = scmp.ne.s32.totalorder %s4339_s27, %s3695_s0  ;;  %p3702_p13 = scmp.lt.u32.totalorder %s3700_s5, %s3695_s0 }
  0x89   : > { %p3704_p10 = scmp.lt.u32.totalorder %s3695_s0, %s4339_s27 }
  0x8a   : > { %p3698_p0 = pnand %p3696_p8, %p4289_p9  ;;  %p3703_p5 = por %p3702_p13, %p3701_p11 }
  0x8c   : > { %p3699_p7 = pneg %p3698_p0  ;;  %p3705_p1 = por %p3704_p10, %p3703_p5 }
  0x8e   : > { %p3706_p3 = pnand %p3705_p1, %p3699_p7 }
  0x90   : > { %3709 = shalt.err (!%p3706_p3)
}
  0x91   : > { %s3710_s17 = scalar_lea.vmem %s770_s6, 16  ;;  %s4032_s19 = smov [#allocation12]  }
  0x92   : > { %p3711_p12 = scmp.ne.s32.totalorder %s770_s6, %s3710_s17  ;;  %s3715_s23 = sshll.u32 %s4032_s19, 4  ;;  %s3716_s23 = int_to_ptr.vmem [resolvable:$false] %s3715_s23 }
  0x93   : > { %s3717_s4 = scalar_lea.vmem %s3716_s23, 32  ;;  %p3718_p8 = scmp.lt.s32.totalorder %s770_s6, %s3716_s23 }
  0x94   : > { %p3713_p2 = pnand %p3711_p12, %p4289_p9  ;;  %p3719_p0 = scmp.lt.s32.totalorder %s3717_s4, %s3710_s17 }
  0x96   : > { %p3714_p4 = pneg %p3713_p2  ;;  %p3720_p6 = por %p3719_p0, %p3718_p8 }
  0x98   : > { %p3721_p11 = pnand %p3720_p6, %p3714_p4 }
  0x9a   : > { %3724 = shalt.err (!%p3721_p11)
}
  0x9b   : > { %p5011_p13 = scmp.ne.s32.totalorder %s5003_s1, 0  ;;  %s3017_s0 = sshll.u32 %s4230_s28, 7 }
  0x9c   : > { %s3138_s24 = sshll.u32 %s4025_s21, 11  ;;  %s807_s16 = scalar_lea.vmem [#allocation15], %s3017_s0 }
  0x9d   : > { %3406 = dma.hbm_to_vmem [thread:$0]  (!%p5011_p13), %s4339_s27, 16, %s770_s6, %s4972_s10  }
  0x9e   : > { %s4367_s23 = scalar_lea.hbm %s4937_s12, %s3138_s24  ;;  %s814_s17 = sshll.u32 %s807_s16, 4  ;;  %s4369_s17 = int_to_ptr.vmem [resolvable:$true] %s814_s17 }
  0x9f   : > { %s4033_s19 = smov [#allocation21]   ;;  %s4976_s22 = scalar_lea.sflag [#allocation16], %s4233_s29 }
  0xa0   : > { %s4371_s4 = sshll.u32 %s4033_s19, 4  ;;  %s3725_s27 = scalar_lea.hbm %s4367_s23, 2048  ;;  %s642_s4 = int_to_ptr.vmem [resolvable:$true] %s4371_s4 }
  0xa1   : > { %p3726_p6 = scmp.ne.s32.totalorder %s4367_s23, %s3725_s27  ;;  %s3730_s5 = scalar_lea.hbm %s4937_s12, 4096 }
  0xa2   : > { %p3731_p10 = scmp.lt.u32.totalorder %s4367_s23, %s4937_s12  ;;  %p3732_p1 = scmp.lt.u32.totalorder %s3730_s5, %s3725_s27 }
  0xa3   : > { %p3728_p7 = pnand %p3726_p6, %p4289_p9  ;;  %p3734_p12 = scmp.lt.u32.totalorder %s3725_s27, %s4367_s23 }
  0xa4   : > { %p3733_p3 = por %p3732_p1, %p3731_p10 }
  0xa5   : > { %p3729_p5 = pneg %p3728_p7 }
  0xa6   : > { %p3735_p2 = por %p3734_p12, %p3733_p3 }
  0xa8   : > { %p3736_p4 = pnand %p3735_p2, %p3729_p5 }
  0xaa   : > { %3739 = shalt.err (!%p3736_p4)
}
  0xab   : > { %s3740_s0 = scalar_lea.vmem %s4369_s17, 2048  ;;  %s4034_s16 = smov [#allocation15]  }
  0xac   : > { %p3741_p8 = scmp.ne.s32.totalorder %s4369_s17, %s3740_s0  ;;  %s3745_s19 = sshll.u32 %s4034_s16, 4  ;;  %s3746_s19 = int_to_ptr.vmem [resolvable:$false] %s3745_s19 }
  0xad   : > { %s3747_s10 = scalar_lea.vmem %s3746_s19, 4096  ;;  %p3748_p6 = scmp.lt.s32.totalorder %s4369_s17, %s3746_s19 }
  0xae   : > { %p3743_p0 = pnand %p3741_p8, %p4289_p9  ;;  %p3749_p7 = scmp.lt.s32.totalorder %s3747_s10, %s3740_s0 }
  0xb0   : > { %p3744_p11 = pneg %p3743_p0  ;;  %p3750_p10 = por %p3749_p7, %p3748_p6 }
  0xb2   : > { %p3751_p1 = pnand %p3750_p10, %p3744_p11 }
  0xb4   : > { %3754 = shalt.err (!%p3751_p1)
}
  0xb5   : > { %s5012_s27 = smov 4   ;;  %s5013_s6 = smov 64  }
  0xb6   : > { %3412 = dma.hbm_to_vmem [thread:$0]  (!%p5011_p13), %s4367_s23, 2048, %s4369_s17, %s4976_s22, %s5013_s6, %s5013_s6, %s5012_s27  }
  0xb7   : > { %s3755_s13 = scalar_lea.hbm %s4943_s18, 1024  ;;  %p5014_p3 = scmp.ne.s32.totalorder %s5002_s3, 0 }
  0xb8   : > { %p3756_p5 = scmp.ne.s32.totalorder %s4943_s18, %s3755_s13  ;;  %p3762_p8 = scmp.lt.u32.totalorder %s3755_s13, %s4943_s18 }
  0xb9   : > { %p5015_p12 = pneg %p5014_p3 }
  0xbb   : > { %p3758_p2 = pnand %p3756_p5, %p5015_p12 }
  0xbd   : > { %p3759_p4 = pneg %p3758_p2 }
  0xbf   : > { %p3764_p0 = pnand %p3762_p8, %p3759_p4 }
  0xc1   : > { %3767 = shalt.err (!%p3764_p0)
}
  0xc2   : > { %s3768_s23 = scalar_lea.vmem %s642_s4, 1024  ;;  %p5016_p6 = pmov %p5015_p12 }
  0xc3   : > { %p3769_p11 = scmp.ne.s32.totalorder %s642_s4, %s3768_s23  ;;  %p3776_p1 = scmp.lt.s32.totalorder %s642_s4, %s642_s4 }
  0xc4   : > { %p3777_p13 = scmp.lt.s32.totalorder %s3768_s23, %s3768_s23 }
  0xc5   : > { %p3771_p7 = pnand %p3769_p11, %p5016_p6 }
  0xc6   : > { %p3778_p9 = por %p3777_p13, %p3776_p1 }
  0xc7   : > { %p3772_p10 = pneg %p3771_p7 }
  0xc9   : > { %p3779_p5 = pnand %p3778_p9, %p3772_p10 }
  0xcb   : > { %3782 = shalt.err (!%p3779_p5)
}
  0xcc   : > { %3387 = dma.hbm_to_vmem [thread:$0]  (!%p5014_p3), %s4943_s18, 1024, %s642_s4, [#allocation22], %s5013_s6, %s5013_s6, %s5012_s27  }
  0xcd   : > { %s3347_s5 = smul.u32 192, %s4230_s28  ;;  %s5017_s10 = sld [smem:[#allocation39_spill]] }
  0xce   : > { %s3348_s13 = smul.u32 3072, %s4025_s21  ;;  %s665_s24 = scalar_lea.sflag [#allocation5], %s4230_s28 }
  0xcf   : > { %s668_s3 = scalar_lea.vmem [#allocation4], %s3347_s5  ;;  %p5018_p13 = scmp.ne.s32.totalorder %s5008_s20, 0 }
  0xd0   : > { %s675_s17 = sshll.u32 %s668_s3, 4  ;;  %s4432_s17 = int_to_ptr.vmem [resolvable:$true] %s675_s17 }
  0xd3   : > { %s4430_s23 = scalar_lea.hbm %s5017_s10, %s3348_s13  ;;  %s3788_s16 = scalar_lea.hbm %s5017_s10, 6144 }
  0xd4   : > { %s3783_s22 = scalar_lea.hbm %s4430_s23, 3072  ;;  %p3789_p2 = scmp.lt.u32.totalorder %s4430_s23, %s5017_s10 }
  0xd5   : > { %p3784_p9 = scmp.ne.s32.totalorder %s4430_s23, %s3783_s22  ;;  %p3790_p4 = scmp.lt.u32.totalorder %s3788_s16, %s3783_s22 }
  0xd6   : > { %p3792_p0 = scmp.lt.u32.totalorder %s3783_s22, %s4430_s23 }
  0xd7   : > { %p3786_p3 = pnand %p3784_p9, %p5018_p13  ;;  %p3791_p8 = por %p3790_p4, %p3789_p2 }
  0xd9   : > { %p3787_p12 = pneg %p3786_p3  ;;  %p3793_p11 = por %p3792_p0, %p3791_p8 }
  0xdb   : > { %p3794_p6 = pnand %p3793_p11, %p3787_p12 }
  0xdd   : > { %3797 = shalt.err (!%p3794_p6)
}
  0xde   : > { %s3798_s5 = scalar_lea.vmem %s4432_s17, 3072  ;;  %s4035_s0 = smov [#allocation4]  }
  0xdf   : > { %p3799_p7 = scmp.ne.s32.totalorder %s4432_s17, %s3798_s5  ;;  %s3803_s3 = sshll.u32 %s4035_s0, 4  ;;  %s3804_s3 = int_to_ptr.vmem [resolvable:$false] %s3803_s3 }
  0xe0   : > { %s3805_s4 = scalar_lea.vmem %s3804_s3, 6144  ;;  %p3806_p5 = scmp.lt.s32.totalorder %s4432_s17, %s3804_s3 }
  0xe1   : > { %p3801_p10 = pnand %p3799_p7, %p5018_p13  ;;  %p3807_p9 = scmp.lt.s32.totalorder %s3805_s4, %s3798_s5 }
  0xe3   : > { %p3802_p1 = pneg %p3801_p10  ;;  %p3808_p3 = por %p3807_p9, %p3806_p5 }
  0xe5   : > { %p3809_p2 = pnand %p3808_p3, %p3802_p1 }
  0xe7   : > { %3812 = shalt.err (!%p3809_p2)
}
  0xe8   : > { %s4036_s22 = smov 192   ;;  %s4037_s16 = smov 12  }
  0xe9   : > { %p5019_p12 = scmp.ne.s32.totalorder %s5003_s1, 0  ;;  %s3136_s13 = sshll.u32 %s4025_s21, 10 }
  0xea   : > { %s5020_s19 = sshll.u32 %s4230_s28, 6  ;;  %s5021_s7 = sld [smem:[#allocation41_spill]] }
  0xeb   : > { %3391 = dma.hbm_to_vmem [thread:$0]  (!%p5019_p12), %s4430_s23, 3072, %s4432_s17, %s665_s24, %s4036_s22, %s4036_s22, %s4037_s16  }
  0xec   : > { %s708_s0 = scalar_lea.vmem [#allocation8], %s5020_s19 }
  0xed   : > { %s715_s3 = sshll.u32 %s708_s0, 4  ;;  %s4466_s3 = int_to_ptr.vmem [resolvable:$true] %s715_s3 }
  0xf0   : > { %s4464_s9 = scalar_lea.hbm %s5021_s7, %s3136_s13  ;;  %s3818_s24 = scalar_lea.hbm %s5021_s7, 2048 }
  0xf1   : > { %s3813_s10 = scalar_lea.hbm %s4464_s9, 1024  ;;  %p3819_p11 = scmp.lt.u32.totalorder %s4464_s9, %s5021_s7 }
  0xf2   : > { %p3814_p4 = scmp.ne.s32.totalorder %s4464_s9, %s3813_s10  ;;  %p3820_p6 = scmp.lt.u32.totalorder %s3818_s24, %s3813_s10 }
  0xf3   : > { %p3822_p10 = scmp.lt.u32.totalorder %s3813_s10, %s4464_s9 }
  0xf4   : > { %p3816_p8 = pnand %p3814_p4, %p5018_p13  ;;  %p3821_p7 = por %p3820_p6, %p3819_p11 }
  0xf6   : > { %p3817_p0 = pneg %p3816_p8  ;;  %p3823_p1 = por %p3822_p10, %p3821_p7 }
  0xf8   : > { %p3824_p5 = pnand %p3823_p1, %p3817_p0 }
  0xfa   : > { %3827 = shalt.err (!%p3824_p5)
}
  0xfb   : > { %s3828_s13 = scalar_lea.vmem %s4466_s3, 1024  ;;  %s4038_s19 = smov [#allocation8]  }
  0xfc   : > { %p3829_p9 = scmp.ne.s32.totalorder %s4466_s3, %s3828_s13  ;;  %s3833_s0 = sshll.u32 %s4038_s19, 4  ;;  %s3834_s0 = int_to_ptr.vmem [resolvable:$false] %s3833_s0 }
  0xfd   : > { %s3835_s5 = scalar_lea.vmem %s3834_s0, 2048  ;;  %p3836_p4 = scmp.lt.s32.totalorder %s4466_s3, %s3834_s0 }
  0xfe   : > { %p3831_p3 = pnand %p3829_p9, %p5018_p13  ;;  %p3837_p8 = scmp.lt.s32.totalorder %s3835_s5, %s3828_s13 }
 0x100   : > { %p3832_p2 = pneg %p3831_p3  ;;  %p3838_p11 = por %p3837_p8, %p3836_p4 }
 0x102   : > { %p3839_p6 = pnand %p3838_p11, %p3832_p2 }
 0x104   : > { %3842 = shalt.err (!%p3839_p6)
}
 0x105   : > { %s5022_s10 = scalar_lea.sflag [#allocation7], %s4233_s29  ;;  %s4498_s17 = scalar_lea.hbm %s4933_s8, %s4269_s2 }
 0x106   : > { %3397 = dma.hbm_to_vmem [thread:$0]  (!%p5019_p12), %s4464_s9, 1024, %s4466_s3, %s5022_s10, %s5013_s6, %s5013_s6, %s5012_s27  }
 0x107   : > { %s745_s24 = scalar_lea.vmem [#allocation11], %s4230_s28  ;;  %s3014_s16 = sshll.u32 %s4230_s28, 1 }
 0x108   : > { %s752_s22 = sshll.u32 %s745_s24, 4  ;;  %s3843_s13 = scalar_lea.hbm %s4498_s17, 16  ;;  %s753_s22 = int_to_ptr.vmem [resolvable:$true] %s752_s22 }
 0x109   : > { %p3844_p0 = scmp.ne.s32.totalorder %s4498_s17, %s3843_s13  ;;  %s3848_s27 = scalar_lea.hbm %s4933_s8, 32 }
 0x10a   : > { %p3849_p1 = scmp.lt.u32.totalorder %s4498_s17, %s4933_s8  ;;  %p3850_p5 = scmp.lt.u32.totalorder %s3848_s27, %s3843_s13 }
 0x10b   : > { %p3846_p7 = pnand %p3844_p0, %p5018_p13  ;;  %p3852_p3 = scmp.lt.u32.totalorder %s3843_s13, %s4498_s17 }
 0x10c   : > { %p3851_p9 = por %p3850_p5, %p3849_p1 }
 0x10d   : > { %p3847_p10 = pneg %p3846_p7 }
 0x10e   : > { %p3853_p2 = por %p3852_p3, %p3851_p9 }
 0x110   : > { %p3854_p4 = pnand %p3853_p2, %p3847_p10 }
 0x112   : > { %3857 = shalt.err (!%p3854_p4)
}
 0x113   : > { %s3858_s0 = scalar_lea.vmem %s753_s22, 16  ;;  %s4039_s5 = smov [#allocation11]  }
 0x114   : > { %p3859_p8 = scmp.ne.s32.totalorder %s753_s22, %s3858_s0  ;;  %s3863_s10 = sshll.u32 %s4039_s5, 4  ;;  %s3864_s10 = int_to_ptr.vmem [resolvable:$false] %s3863_s10 }
 0x115   : > { %s3865_s4 = scalar_lea.vmem %s3864_s10, 32  ;;  %p3866_p0 = scmp.lt.s32.totalorder %s753_s22, %s3864_s10 }
 0x116   : > { %p3861_p11 = pnand %p3859_p8, %p5018_p13  ;;  %p3867_p7 = scmp.lt.s32.totalorder %s3865_s4, %s3858_s0 }
 0x118   : > { %p3862_p6 = pneg %p3861_p11  ;;  %p3868_p12 = por %p3867_p7, %p3866_p0 }
 0x11a   : > { %p3869_p1 = pnand %p3868_p12, %p3862_p6 }
 0x11c   : > { %3872 = shalt.err (!%p3869_p1)
}
 0x11d   : > { %p5023_p5 = scmp.ne.s32.totalorder %s5003_s1, 0  ;;  %s5024_s23 = scalar_lea.sflag [#allocation10], %s4233_s29 }
 0x11e   : > { %s3137_s24 = sshll.u32 %s4025_s21, 5  ;;  %s788_s13 = scalar_lea.vmem [#allocation14], %s3014_s16 }
 0x11f   : > { %3403 = dma.hbm_to_vmem [thread:$0]  (!%p5023_p5), %s4498_s17, 16, %s753_s22, %s5024_s23  }
 0x120   : > { %s796_s19 = sshll.u32 %s788_s13, 4  ;;  %s794_s6 = scalar_lea.hbm %s4936_s11, %s3137_s24  ;;  %s797_s19 = int_to_ptr.vmem [resolvable:$true] %s796_s19 }
 0x121   : > { %s3873_s3 = scalar_lea.hbm %s794_s6, 32  ;;  %s3878_s10 = scalar_lea.hbm %s4936_s11, 64 }
 0x122   : > { %p3874_p12 = scmp.ne.s32.totalorder %s794_s6, %s3873_s3  ;;  %p3879_p3 = scmp.lt.u32.totalorder %s794_s6, %s4936_s11 }
 0x123   : > { %p3880_p2 = scmp.lt.u32.totalorder %s3878_s10, %s3873_s3  ;;  %p3882_p8 = scmp.lt.u32.totalorder %s3873_s3, %s794_s6 }
 0x124   : > { %p3876_p10 = pnand %p3874_p12, %p5018_p13 }
 0x125   : > { %p3881_p4 = por %p3880_p2, %p3879_p3 }
 0x126   : > { %p3877_p9 = pneg %p3876_p10 }
 0x127   : > { %p3883_p11 = por %p3882_p8, %p3881_p4 }
 0x129   : > { %p3884_p6 = pnand %p3883_p11, %p3877_p9 }
 0x12b   : > { %3887 = shalt.err (!%p3884_p6)
}
 0x12c   : > { %s3888_s21 = scalar_lea.vmem %s797_s19, 32  ;;  %s4040_s22 = smov [#allocation14]  }
 0x12d   : > { %p3889_p0 = scmp.ne.s32.totalorder %s797_s19, %s3888_s21  ;;  %s3893_s16 = sshll.u32 %s4040_s22, 4  ;;  %s3894_s16 = int_to_ptr.vmem [resolvable:$false] %s3893_s16 }
 0x12e   : > { %s3895_s23 = scalar_lea.vmem %s3894_s16, 64  ;;  %p3896_p12 = scmp.lt.s32.totalorder %s797_s19, %s3894_s16 }
 0x12f   : > { %p3891_p7 = pnand %p3889_p0, %p5018_p13  ;;  %p3897_p10 = scmp.lt.s32.totalorder %s3895_s23, %s3888_s21 }
 0x131   : > { %p3892_p1 = pneg %p3891_p7  ;;  %p3898_p5 = por %p3897_p10, %p3896_p12 }
 0x133   : > { %p3899_p2 = pnand %p3898_p5, %p3892_p1 }
 0x135   : > { %3902 = shalt.err (!%p3899_p2)
}
 0x136   : > { %p5025_p3 = scmp.ne.s32.totalorder %s5003_s1, 0  ;;  %s5026_s24 = scalar_lea.sflag [#allocation13], %s4233_s29 }
 0x137   : > { %s4545_s27 = scalar_lea.hbm %s4939_s14, %s4269_s2  ;;  %s833_s3 = scalar_lea.vmem [#allocation17], %s4230_s28 }
 0x138   : > { %3409 = dma.hbm_to_vmem [thread:$0]  (!%p5025_p3), %s794_s6, 32, %s797_s19, %s5026_s24  }
 0x139   : > { %s840_s0 = sshll.u32 %s833_s3, 4  ;;  %s3903_s5 = scalar_lea.hbm %s4545_s27, 16  ;;  %s841_s0 = int_to_ptr.vmem [resolvable:$true] %s840_s0 }
 0x13a   : > { %p3904_p5 = scmp.ne.s32.totalorder %s4545_s27, %s3903_s5  ;;  %s3908_s19 = scalar_lea.hbm %s4939_s14, 32 }
 0x13b   : > { %p3909_p8 = scmp.lt.u32.totalorder %s4545_s27, %s4939_s14  ;;  %p3910_p11 = scmp.lt.u32.totalorder %s3908_s19, %s3903_s5 }
 0x13c   : > { %p3906_p9 = pnand %p3904_p5, %p5018_p13  ;;  %p3912_p0 = scmp.lt.u32.totalorder %s3903_s5, %s4545_s27 }
 0x13d   : > { %p3911_p6 = por %p3910_p11, %p3909_p8 }
 0x13e   : > { %p3907_p4 = pneg %p3906_p9 }
 0x13f   : > { %p3913_p7 = por %p3912_p0, %p3911_p6 }
 0x141   : > { %p3914_p1 = pnand %p3913_p7, %p3907_p4 }
 0x143   : > { %3917 = shalt.err (!%p3914_p1)
}
 0x144   : > { %s3918_s21 = scalar_lea.vmem %s841_s0, 16  ;;  %s4041_s22 = smov [#allocation17]  }
 0x145   : > { %p3919_p12 = scmp.ne.s32.totalorder %s841_s0, %s3918_s21  ;;  %s3923_s16 = sshll.u32 %s4041_s22, 4  ;;  %s3924_s16 = int_to_ptr.vmem [resolvable:$false] %s3923_s16 }
 0x146   : > { %s3925_s23 = scalar_lea.vmem %s3924_s16, 32  ;;  %p3926_p5 = scmp.lt.s32.totalorder %s841_s0, %s3924_s16 }
 0x147   : > { %p3921_p10 = pnand %p3919_p12, %p5018_p13  ;;  %p3927_p9 = scmp.lt.s32.totalorder %s3925_s23, %s3918_s21 }
 0x149   : > { %p3922_p2 = pneg %p3921_p10  ;;  %p3928_p3 = por %p3927_p9, %p3926_p5 }
 0x14b   : > { %p3929_p8 = pnand %p3928_p3, %p3922_p2 }
 0x14d   : > { %3932 = shalt.err (!%p3929_p8)
}
 0x14e   : > { %p5027_p11 = scmp.ne.s32.totalorder %s5003_s1, 0  ;;  %s5028_s24 = scalar_lea.sflag [#allocation16], %s4233_s29 }
 0x14f   : > { %s4571_s3 = scalar_lea.hbm %s4940_s15, %s4269_s2  ;;  %s850_s5 = scalar_lea.vmem [#allocation18], %s4230_s28 }
 0x150   : > { %3415 = dma.hbm_to_vmem [thread:$0]  (!%p5027_p11), %s4545_s27, 16, %s841_s0, %s5028_s24  }
 0x151   : > { %s857_s10 = sshll.u32 %s850_s5, 4  ;;  %s848_s4 = scalar_lea.sflag [#allocation19], %s4233_s29  ;;  %s858_s10 = int_to_ptr.vmem [resolvable:$true] %s857_s10 }
 0x152   : > { %s3933_s19 = scalar_lea.hbm %s4571_s3, 16  ;;  %s3938_s0 = scalar_lea.hbm %s4940_s15, 32 }
 0x153   : > { %p3934_p3 = scmp.ne.s32.totalorder %s4571_s3, %s3933_s19  ;;  %p3939_p0 = scmp.lt.u32.totalorder %s4571_s3, %s4940_s15 }
 0x154   : > { %p3940_p7 = scmp.lt.u32.totalorder %s3938_s0, %s3933_s19  ;;  %p3942_p12 = scmp.lt.u32.totalorder %s3933_s19, %s4571_s3 }
 0x155   : > { %p3936_p4 = pnand %p3934_p3, %p5018_p13 }
 0x156   : > { %p3941_p1 = por %p3940_p7, %p3939_p0 }
 0x157   : > { %p3937_p6 = pneg %p3936_p4 }
 0x158   : > { %p3943_p10 = por %p3942_p12, %p3941_p1 }
 0x15a   : > { %p3944_p2 = pnand %p3943_p10, %p3937_p6 }
 0x15c   : > { %3947 = shalt.err (!%p3944_p2)
}
 0x15d   : > { %s3948_s28 = scalar_lea.vmem %s858_s10, 16  ;;  %s4042_s29 = smov [#allocation18]  }
 0x15e   : > { %p3949_p5 = scmp.ne.s32.totalorder %s858_s10, %s3948_s28  ;;  %s3953_s21 = sshll.u32 %s4042_s29, 4  ;;  %s3954_s21 = int_to_ptr.vmem [resolvable:$false] %s3953_s21 }
 0x15f   : > { %s3955_s22 = scalar_lea.vmem %s3954_s21, 32  ;;  %p3956_p3 = scmp.lt.s32.totalorder %s858_s10, %s3954_s21 }
 0x160   : > { %p3951_p9 = pnand %p3949_p5, %p5018_p13  ;;  %p3957_p4 = scmp.lt.s32.totalorder %s3955_s22, %s3948_s28 }
 0x162   : > { %p3952_p8 = pneg %p3951_p9  ;;  %p3958_p11 = por %p3957_p4, %p3956_p3 }
 0x164   : > { %p3959_p0 = pnand %p3958_p11, %p3952_p8 }
 0x166   : > { %3962 = shalt.err (!%p3959_p0)
}
 0x167   : > { %p5029_p7 = scmp.ne.s32.totalorder %s5003_s1, 0  ;;  %p5030_p6 = scmp.ne.s32.totalorder %s5001_s26, 0 }
 0x168   : > { %s4595_s20 = sand.u32 (!%p5030_p6), 1, %s4017_s30   ;;  %p5031_p13 = scmp.ne.s32.totalorder (!%p5030_p6), %s5000_s25, 0 }
 0x169   : > { %3418 = dma.hbm_to_vmem [thread:$0]  (!%p5029_p7), %s4571_s3, 16, %s858_s10, %s848_s4  }
 0x16a   : > { %866 = sbr.rel (%p5030_p6) target bundleno = 4208 (0x1070), region = 108  ;;  %s869_s23 = scalar_lea.sflag (!%p5030_p6), [#allocation5], %s4595_s20 }
 0x16b   : > { %s3351_s16 = smul.u32 (!%p5030_p6), 192, %s4595_s20 }
 0x16d   : > { %s4599_s24 = scalar_lea.vmem (!%p5030_p6), [#allocation4], %s3351_s16 }
 0x171   : > { %3980 = dma.done.wait (%p5031_p13), %s869_s23, 3072  }
 0x172   : > { %3982 = vsyncadd (%p5031_p13), %s869_s23, 4294964224  ;;  %s5032_s1 = sld [smem:[#allocation32_spill]]  ;;  %s3352_s13 = smul.u32 3, %s4595_s20 }
 0x174   : > { %s4607_s3 = scalar_lea.vmem [#allocation6], %s3352_s13 }
 0x178   : > { %s877_s26 = sand.u32 1, %s5032_s1  }
 0x179   : > { %s878_s9 = scalar_lea.sflag [#allocation7], %s877_s26 }
 0x17a   : > { %3984 = dma.done.wait (%p5031_p13), %s878_s9, 1072  }
 0x17b   : > { %3986 = vsyncadd (%p5031_p13), %s878_s9, 4294966224  ;;  %s3023_s5 = sshll.u32 %s4595_s20, 6  ;;  %s896_s4 = scalar_lea.sflag [#allocation10], %s877_s26 }
 0x17c   : > { %s4614_s10 = scalar_lea.vmem [#allocation8], %s3023_s5  ;;  %s898_s19 = scalar_lea.vmem [#allocation9], %s4595_s20 }
 0x17d   : > { %3988 = dma.done.wait (%p5031_p13), %s896_s4, 32  }
 0x17e   : > { %3990 = vsyncadd (%p5031_p13), %s896_s4, 4294967264  ;;  %s912_s27 = scalar_lea.sflag [#allocation13], %s877_s26 }
 0x17f   : > { %3992 = dma.done.wait (%p5031_p13), %s912_s27, 48  }
 0x180   : > { %3994 = vsyncadd (%p5031_p13), %s912_s27, 4294967248  ;;  %s3024_s17 = sshll.u32 %s4595_s20, 1  ;;  %s3025_s2 = sshll.u32 %s4595_s20, 7 }
 0x181   : > { %s4629_s28 = scalar_lea.vmem [#allocation14], %s3024_s17  ;;  %s929_s29 = scalar_lea.sflag [#allocation16], %s877_s26 }
 0x182   : > { %s4631_s21 = scalar_lea.vmem [#allocation15], %s3025_s2 }
 0x183   : > { %3996 = dma.done.wait (%p5031_p13), %s929_s29, 2064  }
 0x184   : > { %3998 = vsyncadd (%p5031_p13), %s929_s29, 4294965232  ;;  %s946_s16 = scalar_lea.sflag [#allocation19], %s877_s26 }
 0x185   : > { %4000 = dma.done.wait (%p5031_p13), %s946_s16, 16  }
 0x186   : > { %4002 = vsyncadd (%p5031_p13), %s946_s16, 4294967280  ;;  %p5033_p11 = scmp.eq.s32.totalorder %s5032_s1, 0 }
 0x188   : > { %4004 = dma.done.wait (%p5033_p11), [#allocation19], 1024   ;;  %p5034_p1 = pmov %p5033_p11 }
 0x18a   : > { %4006 = vsyncadd (%p5034_p1), [#allocation19], 4294966272  ;;  %p5035_p12 = pmov %p5034_p1 }
 0x18b   : > { %p5036_p10 = pmov %p5034_p1 }
 0x18c   : > { %4008 = dma.done.wait (%p5035_p12), [#allocation22], 1024  }
 0x18d   : > { %4010 = vsyncadd (%p5036_p10), [#allocation22], 4294966272  ;;  %p1060_p2 = scmp.lt.s32.totalorder %s5032_s1, 1  ;;  %s5037_s5 = sld [smem:[#allocation45_spill]] }
 0x18e   : > { %s5038_s2 = sld [smem:[#allocation44_spill]]  ;;  %p5039_p5 = scmp.ne.s32.totalorder %s5032_s1, 0 }
 0x18f   : > { %s4653_s26 = scalar_select %p1060_p2, %s5032_s1, 1 }
 0x190   : > { %1072 = sbr.rel (%p5039_p5) target bundleno = 725 (0x2d5), region = 160  ;;  %s5040_s22 = sld [smem:[#allocation35_spill]] (!%p5039_p5) }
 0x191   : > { %s3139_s25 = sshll.u32 %s4653_s26, 7  ;;  %s5041_s0 = sld [smem:[#allocation37_spill]] (!%p5039_p5) }
 0x192   : > { %s5042_s13 = sld [smem:[#allocation38_spill]] (!%p5039_p5) }
 0x193   : > { %s1067_s4 = scalar_lea.vmem %s5037_s5, %s4653_s26 }
 0x194   : > { %s4663_s29 = scalar_lea.vmem %s5038_s2, %s3139_s25 }
 0x196   : > { %v1073_v1 = vld [vmem:[%s5040_s22] sm:$0xff] (!%p5039_p5)  ;;  %v1074_v2 = vld [vmem:[%s5040_s22 + $0x8] sm:$0xff] (!%p5039_p5) }
 0x197   : > { %1077 = vadd.xlane.f32.xlu0 %v1073_v1  ;;  %v3031_v19 = vld [vmem:[%s5041_s0] ss:$0 sm:$0xff] }
 0x198   : > { %v3032_v23 = vld [vmem:[%s5042_s13] ss:$0 sm:$0xff] }
 0x19b   : > { %1079 = vadd.xlane.f32.xlu0 %v1074_v2 }
 0x224   : > { %v1078_v3 = vpop.xlane.xlu0 %1077 }
 0x225   : > { %v1082_v4 = vmul.f32 0.0078125, %v1078_v3 }
 0x227   : > { %v1084_v5 = vsub.f32 %v1073_v1, %v1082_v4 }
 0x228   : > { %v1080_v6 = vpop.xlane.xlu0 %1079 }
 0x229   : > { %v1083_v7 = vmul.f32 0.0078125, %v1080_v6  ;;  %v1086_v8 = vmul.f32 %v1084_v5, %v1084_v5 }
 0x22b   : > { %v1085_v9 = vsub.f32 %v1074_v2, %v1083_v7  ;;  %1088 = vadd.xlane.f32.xlu1 %v1086_v8 }
 0x22d   : > { %v1087_v10 = vmul.f32 %v1085_v9, %v1085_v9 }
 0x22f   : > { %1090 = vadd.xlane.f32.xlu1 %v1087_v10 }
 0x2b8   : > { %v1089_v11 = vpop.xlane.xlu1 %1088 }
 0x2b9   : > { %v1092_v12 = vmul.f32 0.0078125, %v1089_v11 }
 0x2bb   : > { %v1094_v13 = vadd.f32 1e-12, %v1092_v12 }
 0x2bc   : > { %v1091_v14 = vpop.xlane.xlu1 %1090 }
 0x2bd   : > { %3469 = vrsqrt.f32 %v1094_v13  ;;  %v1093_v15 = vmul.f32 0.0078125, %v1091_v14 }
 0x2bf   : > { %v1095_v16 = vadd.f32 1e-12, %v1093_v15 }
 0x2c1   : > { %3471 = vrsqrt.f32 %v1095_v16 }
 0x2c7   : > { %v3470_v17 = vpop.eup %3469 }
 0x2c8   : > { %v1098_v18 = vmul.f32 %v3470_v17, %v1084_v5 }
 0x2ca   : > { %v1106_v21 = vmul.f32 %v3031_v19, %v1098_v18 }
 0x2cb   : > { %v3472_v20 = vpop.eup %3471 }
 0x2cc   : > { %v1099_v22 = vmul.f32 %v3472_v20, %v1085_v9  ;;  %v1114_v25 = vadd.f32 %v3032_v23, %v1106_v21 }
 0x2ce   : > { %v1107_v24 = vmul.f32 %v3031_v19, %v1099_v22 }
 0x2d0   : > { %v1115_v26 = vadd.f32 %v3032_v23, %v1107_v24 }
 0x2d2   : > { %v1116_v27 = vpack.c.bf16 %v1115_v26, %v1114_v25 }
 0x2d4   : > { %1117 = vst [vmem:[#allocation2] sm:$0xff] %v1116_v27 }
 0x2d5 PF: > { %v3473_v28 = vld [vmem:[%s4599_s24 + $0x4] ss:$12 sps:$4 sm:$0xff]   ;;  %v3475_v29 = vld [vmem:[%s4599_s24] ss:$12 sps:$4 sm:$0xff]   ;;  %v4043_v30 = vmov 0   ;;  %v4044_v31 = vmov 0.0   ;;  %v1155_v55 = vlaneseq }
 0x2d6   : > { %1330 = vmatprep.mubr.bf16.mxu0 %v4043_v30  ;;  %3215 = vmatprep.subr.bf16.mxu1 %v4044_v31  ;;  %v3476_v32 = vld [vmem:[%s4599_s24 + $0x1c] ss:$12 sps:$4 sm:$0xff]   ;;  %v3478_v33 = vld [vmem:[%s4599_s24 + $0x18] ss:$12 sps:$4 sm:$0xff]   ;;  %v3479_v34 = vld [vmem:[%s4599_s24 + $0x34] ss:$12 sps:$4 sm:$0xff]  }
 0x2d7   : > { %1298 = vmatprep.subr.bf16.mxu0 %v3473_v28  ;;  %v3481_v35 = vld [vmem:[%s4599_s24 + $0x30] ss:$12 sps:$4 sm:$0xff]   ;;  %v3482_v36 = vld [vmem:[%s4599_s24 + $0x4c] ss:$12 sps:$4 sm:$0xff]   ;;  %v3484_v37 = vld [vmem:[%s4599_s24 + $0x48] ss:$12 sps:$4 sm:$0xff]  }
 0x2d8   : > { %1299 = vmatpush1.bf16.msra.mxu0 %v3475_v29  ;;  %v3497_v38 = vld [vmem:[%s4599_s24 + $0x8] ss:$12 sps:$4 sm:$0xff]   ;;  %v3485_v39 = vld [vmem:[%s4599_s24 + $0x64] ss:$12 sps:$4 sm:$0xff]   ;;  %v3498_v40 = vld [vmem:[%s4599_s24 + $0x20] ss:$12 sps:$4 sm:$0xff]  }
 0x2d9   : > { %1300 = vmatprep.subr.bf16.mxu0 %v3476_v32  ;;  %3216 = vmatpush3.bf16.msra.mxu1 %v3497_v38  ;;  %v3487_v41 = vld [vmem:[%s4599_s24 + $0x60] ss:$12 sps:$4 sm:$0xff]   ;;  %v3488_v42 = vld [vmem:[%s4599_s24 + $0x7c] ss:$12 sps:$4 sm:$0xff]   ;;  %v3490_v43 = vld [vmem:[%s4599_s24 + $0x78] ss:$12 sps:$4 sm:$0xff]  }
 0x2da   : > { %3217 = vmatprep.subr.bf16.mxu1 %v4044_v31  ;;  %v3499_v44 = vld [vmem:[%s4599_s24 + $0x38] ss:$12 sps:$4 sm:$0xff]   ;;  %v3491_v45 = vld [vmem:[%s4599_s24 + $0x94] ss:$12 sps:$4 sm:$0xff]   ;;  %v3500_v46 = vld [vmem:[%s4599_s24 + $0x50] ss:$12 sps:$4 sm:$0xff]  }
 0x2db   : > { %v3493_v47 = vld [vmem:[%s4599_s24 + $0x90] ss:$12 sps:$4 sm:$0xff]   ;;  %v3494_v48 = vld [vmem:[%s4599_s24 + $0xac] ss:$12 sps:$4 sm:$0xff]   ;;  %v3501_v49 = vld [vmem:[%s4599_s24 + $0x68] ss:$12 sps:$4 sm:$0xff]  }
 0x2dc   : > { %1301 = vmatpush1.bf16.msra.mxu0 %v3478_v33  ;;  %v3496_v50 = vld [vmem:[%s4599_s24 + $0xa8] ss:$12 sps:$4 sm:$0xff]   ;;  %v3502_v51 = vld [vmem:[%s4599_s24 + $0x80] ss:$12 sps:$4 sm:$0xff]   ;;  %v3503_v53 = vld [vmem:[%s4599_s24 + $0x98] ss:$12 sps:$4 sm:$0xff]  }
 0x2dd   : > { %1302 = vmatprep.subr.bf16.mxu0 %v3479_v34  ;;  %3218 = vmatpush3.bf16.msra.mxu1 %v3498_v40  ;;  %v4707_v52 = vld [vmem:[#allocation2] sm:$0xff]  ;;  %vm4045_vm0 = vmmov 0   ;;  %v4724_v56 = vshrl.u32 %v1155_v55, 7  ;;  %v1153_v58 = vld [vmem:[%s4607_s3] sm:$0x7]  ;;  %vm1436_vm1 = vcmask 523264  }
 0x2de   : > { %3219 = vmatprep.subr.bf16.mxu1 %v4044_v31  ;;  %v3504_v54 = vld [vmem:[%s4599_s24 + $0xb0] ss:$12 sps:$4 sm:$0xff]   ;;  %3231 = vmatprep.mubr.msk.bf16.mxu1 %vm4045_vm0, %v4044_v31  ;;  %s4046_s24 = smov 64   ;;  %vm1559_vm2 = vcmask 1043456   ;;  %v4047_v24 = vmov 1966171168  }
 0x2df   : > { %v1161_v57 = vsub.s32 1, %v4724_v56  ;;  %v4731_v60 = vsub.s32 0, %v4724_v56  ;;  %v1165_v12 = vsub.s32 2, %v4724_v56  ;;  %v1393_v25 = vunpack.c.l.s4 %v4047_v24  ;;  %s5043_s5 = sld [smem:[#allocation36_spill]]  ;;  %s5047_s26 = scalar_lea.vmem [#allocation17], %s4595_s20 }
 0x2e0   : > { %1303 = vmatpush1.bf16.msra.mxu0 %v3481_v35  ;;  %vm1529_vm3 = vcmask 64512   ;;  %s5049_s17 = sld [smem:[#allocation32_spill]] }
 0x2e1   : > { %1304 = vmatprep.subr.bf16.mxu0 %v3482_v36  ;;  %3220 = vmatpush3.bf16.msra.mxu1 %v3499_v44  ;;  %v1162_v59 = vrot.slane %v1153_v58, %v1161_v57  ;;  %v1158_v2 = vrot.slane %v1153_v58, %v4731_v60  ;;  %v1166_v13 = vrot.slane %v1153_v58, %v1165_v12  ;;  %v1394_v26 = vunpack.c.0.s8 %v1393_v25 }
 0x2e2   : > { %3221 = vmatprep.subr.bf16.mxu1 %v4044_v31 }
 0x2e3   : > { %v1397_v28 = vsub.s32 %v1394_v26, %v4724_v56 }
 0x2e4   : > { %1305 = vmatpush1.bf16.msra.mxu0 %v3484_v37 }
 0x2e5   : > { %1306 = vmatprep.subr.bf16.mxu0 %v3485_v39  ;;  %3222 = vmatpush3.bf16.msra.mxu1 %v3500_v46  ;;  %v3057_v27 = vld.sshfl [vmem:[%s5043_s5] sm:$0x11 pattern:$0x75316420] }
 0x2e6   : > { %3223 = vmatprep.subr.bf16.mxu1 %v4044_v31  ;;  %v1391_v29 = vcombine.high %v3057_v27, %v3057_v27  ;;  %v1398_v32 = vrot.slane %v3057_v27, %v1397_v28  ;;  %p3114_p9 = scmp.ne.s32.totalorder %s5049_s17, 1 }
 0x2e7   : > { %vm4049_vm4 = vmmov (!%p3114_p9), 0   ;;  %vm2509_vm5 = vcmask (!%p3114_p9), 1041409   ;;  %s5051_s6 = sld [smem:[#allocation49_spill]] (!%p3114_p9)  ;;  %s5052_s25 = sld [smem:[#allocation48_spill]] (!%p3114_p9)  ;;  %vm2722_vm6 = vcmask (!%p3114_p9), 1041408   ;;  %vm2740_vm7 = vcmask (!%p3114_p9), 1024  }
 0x2e8   : > { %1307 = vmatpush1.bf16.msra.mxu0 %v3487_v41  ;;  %v1405_v33 = vrot.slane %v1391_v29, %v1397_v28  ;;  %v4761_v34 = vrot.slane %v1398_v32, %v4731_v60  ;;  %s5053_s3 = sld [smem:[#allocation50_spill]] (!%p3114_p9) }
 0x2e9   : > { %1308 = vmatprep.subr.bf16.mxu0 %v3488_v42  ;;  %3224 = vmatpush3.bf16.msra.mxu1 %v3501_v49 }
 0x2ea   : > { %3225 = vmatprep.subr.bf16.mxu1 %v4044_v31  ;;  %v4764_v35 = vrot.slane %v1405_v33, %v4731_v60 }
 0x2ec   : > { %1309 = vmatpush1.bf16.msra.mxu0 %v3490_v43 }
 0x2ed   : > { %1310 = vmatprep.subr.bf16.mxu0 %v3491_v45  ;;  %3226 = vmatpush3.bf16.msra.mxu1 %v3502_v51 }
 0x2ee   : > { %3227 = vmatprep.subr.bf16.mxu1 %v4044_v31 }
 0x2f0   : > { %1311 = vmatpush1.bf16.msra.mxu0 %v3493_v47 }
 0x2f1   : > { %1312 = vmatprep.subr.bf16.mxu0 %v3494_v48  ;;  %3228 = vmatpush3.bf16.msra.mxu1 %v3503_v53 }
 0x2f2   : > { %3229 = vmatprep.subr.bf16.mxu1 %v4044_v31 }
 0x2f4   : > { %1313 = vmatpush1.bf16.msra.mxu0 %v3496_v50 }
 0x2f5   : > { %3235 = vmatprep.subr.bf16.mxu0 %v4044_v31  ;;  %3230 = vmatpush3.bf16.msra.mxu1 %v3504_v54 }
 0x2f6   : > { %3241 = vmatprep.subr.bf16.mxu1 %v4044_v31 }
 0x2f7   : > { %1331 = vmatmul.mubr.bf16.vlgmr.msra.gmra.mrb[0].mxu0 %v4707_v52 }
 0x2f8   : > { %3237 = vmatprep.mubr.msk.bf16.mxu0 %vm4045_vm0, %v4044_v31  ;;  %3232 = vmatmul.mubr.bf16.vlgmr.msra.gmra.mrb[0].mxu1 %v4707_v52 }
 0x2f9   : > { %3243 = vmatprep.mubr.msk.bf16.mxu1 %vm4045_vm0, %v4044_v31 }
 0x3ca   : > { %v1332_v61 = vpop.f32.mrb[0].mxu0 }
 0x3cb   : > { %v1334_v62 = vpop.f32.mrb[1].mxu0  ;;  %v1333_v7 = vadd.f32 %v1332_v61, %v1158_v2  ;;  %v1375_v14 = vpop.f32.mrb[0].mxu1 }
 0x3cc   : > { %v1335_v63 = vadd.f32 %v1334_v62, %v1162_v59  ;;  %v1336_v0 = vpop.f32.mrb[2].mxu0  ;;  %v1376_v15 = vadd.f32 %v1375_v14, %v1166_v13  ;;  %v3233_v16 = vpop.f32.mrb[1].mxu1 }
 0x3cd   : > { %v1338_v1 = vpop.f32.mrb[3].mxu0  ;;  %v1337_v9 = vadd.f32 %v1336_v0, %v1158_v2  ;;  %v1432_v10 = vpack.c.bf16 %v1333_v7, %v1333_v7  ;;  %v1378_v17 = vpop.f32.mrb[2].mxu1 }
 0x3ce   : > { %v1434_v3 = vpack.c.bf16 %v1335_v63, %v1335_v63  ;;  %v1339_v4 = vadd.f32 %v1338_v1, %v1162_v59  ;;  %v4746_v18 = vpack.c.bf16 %v1376_v15, %v1376_v15  ;;  %v1379_v19 = vadd.f32 %v1378_v17, %v1166_v13  ;;  %v3234_v20 = vpop.f32.mrb[3].mxu1 }
 0x3cf   : > { %v1433_v11 = vpack.c.bf16 %v1337_v9, %v1337_v9 }
 0x3d0   : > { %v1441_v5 = vsel %vm1436_vm1, %v1434_v3, 0  ;;  %v1435_v6 = vpack.c.bf16 %v1339_v4, %v1339_v4  ;;  %v1561_v21 = vsel %vm1559_vm2, %v4746_v18, 0  ;;  %v4750_v22 = vpack.c.bf16 %v1379_v19, %v1379_v19 }
 0x3d1   : > { %3236 = vmatpush3.bf16.xpose.msra.mxu0 %v1441_v5 }
 0x3d2   : > { %v1487_v8 = vsel %vm1436_vm1, %v1435_v6, 0  ;;  %1706 = vrot.lane.b32.xlu1 %v1435_v6, %s4046_s24  ;;  %3247 = vmatprep.subr.bf16.mxu0 %v4044_v31  ;;  %v1607_v23 = vsel %vm1559_vm2, %v4750_v22, 0 }
 0x3d3   : > { %3242 = vmatpush3.bf16.xpose.msra.mxu1 %v1487_v8 }
 0x3d4   : > { %3253 = vmatprep.subr.bf16.mxu1 %v4044_v31 }
 0x3d8   : > { %3238 = vmatmul.mubr.msk.bf16.vlgmr.msra.gmra.mrb[4].mxu0 %vm1436_vm1, %v1432_v10 }
 0x3d9   : > { %3249 = vmatprep.mubr.msk.bf16.mxu0 %vm4045_vm0, %v4044_v31  ;;  %3248 = vmatpush3.bf16.msra.mxu0 %v1561_v21 }
 0x3da   : > { %3244 = vmatmul.mubr.msk.bf16.vlgmr.msra.gmra.mrb[4].mxu1 %vm1436_vm1, %v1433_v11  ;;  %3259 = vmatprep.subr.bf16.mxu0 %v4044_v31 }
 0x3db   : > { %3255 = vmatprep.mubr.msk.bf16.mxu1 %vm4045_vm0, %v4044_v31  ;;  %3254 = vmatpush3.bf16.msra.mxu1 %v1607_v23 }
 0x3dc   : > { %3265 = vmatprep.subr.bf16.mxu1 %v4044_v31 }
 0x444   : > { %v1707_v62 = vpop.permute.xlu1 %1706 }
 0x445   : > { %v1712_v9 = vsel %vm1436_vm1, %v1707_v62, 0 }
 0x4ab   : > { %v1477_v36 = vpop.f32.mrb[4].mxu0 }
 0x4ac   : > { %v1478_v37 = vadd.f32 %v1477_v36, %v4761_v34  ;;  %v3239_v38 = vpop.f32.mrb[5].mxu0 }
 0x4ad   : > { %v1480_v39 = vpop.f32.mrb[6].mxu0  ;;  %v1523_v40 = vpop.f32.mrb[4].mxu1 }
 0x4ae   : > { %v1524_v41 = vadd.f32 %v1523_v40, %v4764_v35  ;;  %v3240_v42 = vpop.f32.mrb[7].mxu0  ;;  %v3245_v43 = vpop.f32.mrb[5].mxu1  ;;  %v1530_v44 = vsel %vm1529_vm3, %v1478_v37, -inf }
 0x4af   : > { %v1526_v45 = vpop.f32.mrb[6].mxu1  ;;  %1531 = vmax.xlane.f32.xlu0 %v1530_v44 }
 0x4b0   : > { %v3246_v46 = vpop.f32.mrb[7].mxu1  ;;  %v1533_v47 = vsel %vm1529_vm3, %v1524_v41, -inf }
 0x4b3   : > { %1534 = vmax.xlane.f32.xlu0 %v1533_v47 }
 0x4c9   : > { %1654 = vrot.lane.b32.xlu0 %v1434_v3, %s4046_s24 }
 0x53c   : > { %v1532_v48 = vpop.xlane.xlu0 %1531 }
 0x53d   : > { %v1536_v49 = vsub.f32 %v1478_v37, %v1532_v48 }
 0x53f   : > { %v1538_v50 = vmul.f32 1.442695, %v1536_v49 }
 0x540   : > { %v1535_v51 = vpop.xlane.xlu0 %1534 }
 0x541   : > { %3553 = vpow2.f32 %v1538_v50  ;;  %v1537_v53 = vsub.f32 %v1524_v41, %v1535_v51 }
 0x543   : > { %v1540_v54 = vmul.f32 1.442695, %v1537_v53 }
 0x544   : > { %v1655_v3 = vpop.permute.xlu0 %1654 }
 0x545   : > { %3555 = vpow2.f32 %v1540_v54  ;;  %v1660_v6 = vsel %vm1436_vm1, %v1655_v3, 0  ;;  %v3511_v3 = vld [vmem:[%s4614_s10 + $0x30] sm:$0xff]  }
 0x54b   : > { %v3554_v55 = vpop.eup %3553 }
 0x54c   : > { %v1542_v58 = vsel %vm1529_vm3, %v3554_v55, 0.0 }
 0x54d   : > { %1543 = vadd.xlane.f32.xlu1 %v1542_v58 }
 0x54f   : > { %v3556_v59 = vpop.eup %3555 }
 0x550   : > { %v1545_v61 = vsel %vm1529_vm3, %v3556_v59, 0.0 }
 0x551   : > { %1546 = vadd.xlane.f32.xlu1 %v1545_v61 }
 0x562   : > { %1651 = vrot.lane.b32.xlu1 %v1432_v10, %s4046_s24 }
 0x566   : > { %1703 = vrot.lane.b32.xlu1 %v1433_v11, %s4046_s24 }
 0x5da   : > { %v1544_v63 = vpop.xlane.xlu1 %1543 }
 0x5db   : > { %3557 = vrcp.f32 %v1544_v63  ;;  %v3510_v63 = vld [vmem:[%s4614_s10 + $0x28] sm:$0xff]  }
 0x5de   : > { %v1547_v0 = vpop.xlane.xlu1 %1546 }
 0x5df   : > { %3559 = vrcp.f32 %v1547_v0  ;;  %v3506_v0 = vld [vmem:[%s4614_s10 + $0x8] sm:$0xff]  }
 0x5e2   : > { %v1652_v10 = vpop.permute.xlu1 %1651 }
 0x5e5   : > { %v3558_v1 = vpop.eup %3557 }
 0x5e6   : > { %v1550_v2 = vmul.f32 %v3558_v1, %v3554_v55  ;;  %v1704_v11 = vpop.permute.xlu1 %1703  ;;  %v3509_v55 = vld [vmem:[%s4614_s10 + $0x20] sm:$0xff]   ;;  %v3507_v1 = vld [vmem:[%s4614_s10 + $0x10] sm:$0xff]  }
 0x5e8   : > { %v1552_v4 = vpack.c.bf16 %v1550_v2, %v1550_v2  ;;  %v3508_v2 = vld [vmem:[%s4614_s10 + $0x18] sm:$0xff]  }
 0x5e9   : > { %v3560_v5 = vpop.eup %3559 }
 0x5ea   : > { %v1551_v7 = vmul.f32 %v3560_v5, %v3556_v59  ;;  %3250 = vmatmul.mubr.msk.bf16.vlgmr.msra.gmra.mrb[8].mxu0 %vm1529_vm3, %v1552_v4  ;;  %v3512_v4 = vld [vmem:[%s4614_s10 + $0x38] sm:$0xff]  }
 0x5eb   : > { %3260 = vmatpush3.bf16.xpose.msra.mxu0 %v1660_v6  ;;  %3261 = vmatprep.mubr.msk.bf16.mxu0 %vm4045_vm0, %v4044_v31 }
 0x5ec   : > { %v1553_v8 = vpack.c.bf16 %v1551_v7, %v1551_v7  ;;  %3271 = vmatprep.subr.bf16.mxu0 %v4044_v31 }
 0x5ee   : > { %3256 = vmatmul.mubr.msk.bf16.vlgmr.msra.gmra.mrb[8].mxu1 %vm1529_vm3, %v1553_v8 }
 0x5ef   : > { %3266 = vmatpush3.bf16.xpose.msra.mxu1 %v1712_v9  ;;  %3267 = vmatprep.mubr.msk.bf16.mxu1 %vm4045_vm0, %v4044_v31 }
 0x5f0   : > { %3277 = vmatprep.subr.bf16.mxu1 %v4044_v31 }
 0x5f2   : > { %3262 = vmatmul.mubr.msk.bf16.vlgmr.msra.gmra.mrb[12].mxu0 %vm1436_vm1, %v1652_v10 }
 0x5f3   : > { %3273 = vmatprep.mubr.msk.bf16.mxu0 %vm4045_vm0, %v4044_v31 }
 0x5f6   : > { %3268 = vmatmul.mubr.msk.bf16.vlgmr.msra.gmra.mrb[12].mxu1 %vm1436_vm1, %v1704_v11 }
 0x5f7   : > { %3279 = vmatprep.mubr.msk.bf16.mxu1 %vm4045_vm0, %v4044_v31 }
 0x6bd   : > { %v4791_v12 = vpop.f32.mrb[8].mxu0 }
 0x6be   : > { %v3251_v13 = vpop.f32.mrb[9].mxu0 }
 0x6bf   : > { %v1600_v14 = vpop.f32.mrb[10].mxu0 }
 0x6c0   : > { %v3252_v15 = vpop.f32.mrb[11].mxu0 }
 0x6c1   : > { %v4793_v16 = vpop.f32.mrb[8].mxu1 }
 0x6c2   : > { %v1649_v17 = vpack.c.bf16 %v4793_v16, %v4791_v12  ;;  %v3257_v19 = vpop.f32.mrb[9].mxu1 }
 0x6c3   : > { %v1646_v20 = vpop.f32.mrb[10].mxu1 }
 0x6c4   : > { %v3258_v21 = vpop.f32.mrb[11].mxu1 }
 0x6c5   : > { %v1696_v23 = vpop.f32.mrb[12].mxu0 }
 0x6c6   : > { %v1697_v24 = vadd.f32 %v1696_v23, %v4761_v34  ;;  %v3263_v25 = vpop.f32.mrb[13].mxu0  ;;  %v1120_v23 = vunpack.c.h.bf16 %v4707_v52 }
 0x6c7   : > { %v1699_v26 = vpop.f32.mrb[14].mxu0  ;;  %v3076_v25 = vld [vmem:[%s898_s19] ss:$0 sm:$0xff]  ;;  %s5045_s19 = scalar_lea.vmem [#allocation12], %s4595_s20 }
 0x6c8   : > { %v3264_v27 = vpop.f32.mrb[15].mxu0  ;;  %v1754_v28 = vsel %vm1529_vm3, %v1697_v24, -inf }
 0x6c9   : > { %v1748_v29 = vpop.f32.mrb[12].mxu1  ;;  %1755 = vmax.xlane.f32.xlu0 %v1754_v28 }
 0x6ca   : > { %v1749_v32 = vadd.f32 %v1748_v29, %v4764_v35  ;;  %v3269_v33 = vpop.f32.mrb[13].mxu1 }
 0x6cb   : > { %v1751_v36 = vpop.f32.mrb[14].mxu1  ;;  %v3513_v33 = vld [vmem:[%s4663_s29] ss:$8 sps:$4 sm:$0xff]  }
 0x6cc   : > { %v3270_v37 = vpop.f32.mrb[15].mxu1  ;;  %v1757_v38 = vsel %vm1529_vm3, %v1749_v32, -inf  ;;  %v3515_v36 = vld [vmem:[%s4663_s29 + $0x4] ss:$8 sps:$4 sm:$0xff]  }
 0x6cd   : > { %1758 = vmax.xlane.f32.xlu1 %v1757_v38  ;;  %v3518_v37 = vld [vmem:[%s4663_s29 + $0x14] ss:$8 sps:$4 sm:$0xff]  }
 0x6de   : > { %1828 = vrot.lane.b32.xlu1 %v4750_v22, %s4046_s24 }
 0x756   : > { %v1756_v39 = vpop.xlane.xlu0 %1755 }
 0x757   : > { %v1760_v34 = vsub.f32 %v1697_v24, %v1756_v39 }
 0x759   : > { %v1762_v40 = vmul.f32 1.442695, %v1760_v34 }
 0x75a   : > { %v1759_v41 = vpop.xlane.xlu1 %1758 }
 0x75b   : > { %3561 = vpow2.f32 %v1762_v40  ;;  %v1761_v42 = vsub.f32 %v1749_v32, %v1759_v41 }
 0x75d   : > { %v1764_v43 = vmul.f32 1.442695, %v1761_v42 }
 0x75e   : > { %v1829_v44 = vpop.permute.xlu1 %1828 }
 0x75f   : > { %3563 = vpow2.f32 %v1764_v43  ;;  %v1834_v35 = vsel %vm1559_vm2, %v1829_v44, 0 }
 0x760   : > { %3278 = vmatpush3.bf16.msra.mxu1 %v1834_v35  ;;  %v3521_v35 = vld [vmem:[%s4663_s29 + $0x24] ss:$8 sps:$4 sm:$0xff]  }
 0x761   : > { %3295 = vmatprep.subr.bf16.mxu1 %v4044_v31 }
 0x765   : > { %v3562_v45 = vpop.eup %3561 }
 0x766   : > { %v1766_v46 = vsel %vm1529_vm3, %v3562_v45, 0.0 }
 0x767   : > { %1767 = vadd.xlane.f32.xlu0 %v1766_v46  ;;  %v3524_v46 = vld [vmem:[%s4663_s29 + $0x34] ss:$8 sps:$4 sm:$0xff]  }
 0x769   : > { %v3564_v22 = vpop.eup %3563 }
 0x76a   : > { %v1769_v47 = vsel %vm1529_vm3, %v3564_v22, 0.0 }
 0x76b   : > { %1770 = vadd.xlane.f32.xlu0 %v1769_v47  ;;  %v3527_v47 = vld [vmem:[%s4663_s29 + $0x44] ss:$8 sps:$4 sm:$0xff]  }
 0x781   : > { %1779 = vrot.lane.b32.xlu0 %v4746_v18, %s4046_s24  ;;  %v3505_v18 = vld [vmem:[%s4614_s10] sm:$0xff]   ;;  %s5044_s10 = scalar_lea.vmem [#allocation11], %s4595_s20 }
 0x7f4   : > { %v1768_v48 = vpop.xlane.xlu0 %1767 }
 0x7f5   : > { %3565 = vrcp.f32 %v1768_v48  ;;  %v3525_v48 = vld [vmem:[%s4663_s29 + $0x40] ss:$8 sps:$4 sm:$0xff]  }
 0x7f8   : > { %v1771_v49 = vpop.xlane.xlu0 %1770 }
 0x7f9   : > { %3567 = vrcp.f32 %v1771_v49  ;;  %v3530_v49 = vld [vmem:[%s4663_s29 + $0x54] ss:$8 sps:$4 sm:$0xff]  }
 0x7fc   : > { %v1780_v50 = vpop.permute.xlu0 %1779 }
 0x7fd   : > { %v1785_v51 = vsel %vm1559_vm2, %v1780_v50, 0  ;;  %v3528_v50 = vld [vmem:[%s4663_s29 + $0x50] ss:$8 sps:$4 sm:$0xff]  }
 0x7fe   : > { %3272 = vmatpush3.bf16.msra.mxu0 %v1785_v51  ;;  %v3533_v51 = vld [vmem:[%s4663_s29 + $0x64] ss:$8 sps:$4 sm:$0xff]  }
 0x7ff   : > { %v3566_v53 = vpop.eup %3565  ;;  %3283 = vmatprep.subr.bf16.mxu0 %v4044_v31 }
 0x800   : > { %v1774_v54 = vmul.f32 %v3566_v53, %v3562_v45  ;;  %v3519_v45 = vld [vmem:[%s4663_s29 + $0x20] ss:$8 sps:$4 sm:$0xff]  }
 0x801   : > { %v3531_v53 = vld [vmem:[%s4663_s29 + $0x60] ss:$8 sps:$4 sm:$0xff]  }
 0x802   : > { %v1776_v58 = vpack.c.bf16 %v1774_v54, %v1774_v54  ;;  %v3536_v54 = vld [vmem:[%s4663_s29 + $0x74] ss:$8 sps:$4 sm:$0xff]  }
 0x803   : > { %v3568_v59 = vpop.eup %3567 }
 0x804   : > { %v1775_v61 = vmul.f32 %v3568_v59, %v3564_v22  ;;  %3274 = vmatmul.mubr.msk.bf16.vlgmr.msra.gmra.mrb[16].mxu0 %vm1529_vm3, %v1776_v58  ;;  %v3522_v22 = vld [vmem:[%s4663_s29 + $0x30] ss:$8 sps:$4 sm:$0xff]  }
 0x805   : > { %3284 = vmatpush3.bf16.msra.mxu0 %v3509_v55  ;;  %3291 = vmatprep.mubr.msk.bf16.mxu0 %vm4045_vm0, %v4044_v31  ;;  %v3534_v55 = vld [vmem:[%s4663_s29 + $0x70] ss:$8 sps:$4 sm:$0xff]  }
 0x806   : > { %v1777_v62 = vpack.c.bf16 %v1775_v61, %v1775_v61  ;;  %3285 = vmatprep.subr.bf16.mxu0 %v4044_v31 }
 0x808   : > { %3280 = vmatmul.mubr.msk.bf16.vlgmr.msra.gmra.mrb[16].mxu1 %vm1529_vm3, %v1777_v62 }
 0x809   : > { %3296 = vmatpush3.bf16.msra.mxu1 %v3505_v18  ;;  %3303 = vmatprep.mubr.msk.bf16.mxu1 %vm4045_vm0, %v4044_v31 }
 0x80a   : > { %3297 = vmatprep.subr.bf16.mxu1 %v4044_v31  ;;  %3286 = vmatpush3.bf16.msra.mxu0 %v3510_v63 }
 0x80b   : > { %3287 = vmatprep.subr.bf16.mxu0 %v4044_v31 }
 0x80d   : > { %3298 = vmatpush3.bf16.msra.mxu1 %v3506_v0 }
 0x80e   : > { %3299 = vmatprep.subr.bf16.mxu1 %v4044_v31  ;;  %3288 = vmatpush3.bf16.msra.mxu0 %v3511_v3 }
 0x80f   : > { %3289 = vmatprep.subr.bf16.mxu0 %v4044_v31 }
 0x811   : > { %3300 = vmatpush3.bf16.msra.mxu1 %v3507_v1  ;;  %v3077_v1 = vld [vmem:[%s5044_s10] ss:$0 sm:$0xff] }
 0x812   : > { %3301 = vmatprep.subr.bf16.mxu1 %v4044_v31  ;;  %3290 = vmatpush3.bf16.msra.mxu0 %v3512_v4 }
 0x813   : > { %2174 = vmatprep.subr.bf16.mxu0 %v3515_v36 }
 0x815   : > { %3302 = vmatpush3.bf16.msra.mxu1 %v3508_v2 }
 0x818   : > { %3304 = vmatmul.mubr.msk.bf16.vlgmr.msra.gmra.mrb[20].mxu1 %vm1436_vm1, %v1649_v17  ;;  %v1119_v17 = vunpack.c.l.bf16 %v4707_v52  ;;  %v3516_v52 = vld [vmem:[%s4663_s29 + $0x10] ss:$8 sps:$4 sm:$0xff]   ;;  %s5050_s29 = sld [smem:[#allocation47_spill]] (!%p3114_p9) }
 0x8d7   : > { %v1821_v5 = vpop.f32.mrb[16].mxu0 }
 0x8d8   : > { %v3275_v6 = vpop.f32.mrb[17].mxu0 }
 0x8d9   : > { %v1824_v7 = vpop.f32.mrb[18].mxu0  ;;  %v3078_v6 = vld [vmem:[%s5045_s19] ss:$0 sm:$0xff] }
 0x8da   : > { %v3276_v8 = vpop.f32.mrb[19].mxu0 }
 0x8db   : > { %v1870_v9 = vpop.f32.mrb[16].mxu1 }
 0x8dc   : > { %v1876_v10 = vpack.c.bf16 %v1870_v9, %v1821_v5  ;;  %v3281_v11 = vpop.f32.mrb[17].mxu1 }
 0x8dd   : > { %v1873_v13 = vpop.f32.mrb[18].mxu1  ;;  %v3537_v11 = vld [vmem:[%s4631_s21 + $0x40] sm:$0xff]  }
 0x8de   : > { %v3282_v14 = vpop.f32.mrb[19].mxu1  ;;  %3292 = vmatmul.mubr.msk.bf16.vlgmr.msra.gmra.mrb[20].mxu0 %vm1436_vm1, %v1876_v10  ;;  %v3538_v13 = vld [vmem:[%s4631_s21] sm:$0xff]   ;;  %3175 = vmatprep.subr.bf16.mxu1 %v3537_v11 }
 0x8df   : > { %2206 = vmatprep.mubr.bf16.mxu0 %v4043_v30  ;;  %2175 = vmatpush1.bf16.msra.mxu0 %v3513_v33  ;;  %v3539_v14 = vld [vmem:[%s4631_s21 + $0x48] sm:$0xff]  }
 0x8e0   : > { %2176 = vmatprep.subr.bf16.mxu0 %v3518_v37  ;;  %3176 = vmatpush3.bf16.msra.mxu1 %v3538_v13 }
 0x8e1   : > { %3177 = vmatprep.subr.bf16.mxu1 %v3539_v14 }
 0x8e3   : > { %2177 = vmatpush1.bf16.msra.mxu0 %v3516_v52 }
 0x8e4   : > { %2178 = vmatprep.subr.bf16.mxu0 %v3521_v35 }
 0x8e7   : > { %2179 = vmatpush1.bf16.msra.mxu0 %v3519_v45 }
 0x8e8   : > { %2180 = vmatprep.subr.bf16.mxu0 %v3524_v46 }
 0x8eb   : > { %v2006_v12 = vpop.f32.mrb[20].mxu1  ;;  %2181 = vmatpush1.bf16.msra.mxu0 %v3522_v22 }
 0x8ec   : > { %v3305_v15 = vpop.f32.mrb[21].mxu1  ;;  %2182 = vmatprep.subr.bf16.mxu0 %v3527_v47 }
 0x8ed   : > { %v2009_v16 = vpop.f32.mrb[22].mxu1  ;;  %v3541_v15 = vld [vmem:[%s4631_s21 + $0x50] sm:$0xff]  }
 0x8ee   : > { %v3306_v31 = vpop.f32.mrb[23].mxu1 }
 0x8ef   : > { %2183 = vmatpush1.bf16.msra.mxu0 %v3525_v48  ;;  %v3543_v31 = vld [vmem:[%s4631_s21 + $0x58] sm:$0xff]  }
 0x8f0   : > { %2184 = vmatprep.subr.bf16.mxu0 %v3530_v49 }
 0x8f3   : > { %2185 = vmatpush1.bf16.msra.mxu0 %v3528_v50 }
 0x8f4   : > { %2186 = vmatprep.subr.bf16.mxu0 %v3533_v51 }
 0x8f7   : > { %2187 = vmatpush1.bf16.msra.mxu0 %v3531_v53 }
 0x8f8   : > { %2188 = vmatprep.subr.bf16.mxu0 %v3536_v54 }
 0x8fb   : > { %2189 = vmatpush1.bf16.msra.mxu0 %v3534_v55 }
 0x9b1   : > { %v1938_v19 = vpop.f32.mrb[20].mxu0 }
 0x9b2   : > { %v2007_v20 = vadd.f32 %v2006_v12, %v1938_v19  ;;  %v3293_v21 = vpop.f32.mrb[21].mxu0  ;;  %v3540_v12 = vld [vmem:[%s4631_s21 + $0x8] sm:$0xff]   ;;  %v3545_v19 = vld [vmem:[%s4631_s21 + $0x60] sm:$0xff]  }
 0x9b3   : > { %v1941_v24 = vpop.f32.mrb[22].mxu0  ;;  %3178 = vmatpush3.bf16.msra.mxu1 %v3540_v12  ;;  %v3547_v21 = vld [vmem:[%s4631_s21 + $0x68] sm:$0xff]  }
 0x9b4   : > { %v2013_v26 = vadd.f32 %v2007_v20, %v1119_v17  ;;  %v2010_v30 = vadd.f32 %v2009_v16, %v1941_v24  ;;  %v3294_v27 = vpop.f32.mrb[23].mxu0  ;;  %v3542_v16 = vld [vmem:[%s4631_s21 + $0x10] sm:$0xff]   ;;  %3179 = vmatprep.subr.bf16.mxu1 %v3541_v15  ;;  %v3544_v17 = vld [vmem:[%s4631_s21 + $0x18] sm:$0xff]   ;;  %v3546_v20 = vld [vmem:[%s4631_s21 + $0x20] sm:$0xff]  }
 0x9b5   : > { %v3549_v24 = vld [vmem:[%s4631_s21 + $0x70] sm:$0xff]   ;;  %v2082_v27 = vld [vmem:[%s4629_s28] sm:$0x3] }
 0x9b6   : > { %v2014_v28 = vadd.f32 %v2010_v30, %v1120_v23  ;;  %v2022_v29 = vadd.f32 %v3076_v25, %v2013_v26  ;;  %v3548_v23 = vld [vmem:[%s4631_s21 + $0x28] sm:$0xff]   ;;  %v3551_v26 = vld [vmem:[%s4631_s21 + $0x78] sm:$0xff]  }
 0x9b7   : > { %3180 = vmatpush3.bf16.msra.mxu1 %v3542_v16  ;;  %v3552_v30 = vld [vmem:[%s4631_s21 + $0x38] sm:$0xff]   ;;  %v3095_v16 = vld [vmem:[%s1067_s4] ss:$0 sm:$0xff]  ;;  %s5048_s4 = scalar_lea.vmem [#allocation18], %s4595_s20 }
 0x9b8   : > { %2026 = vadd.xlane.f32.xlu1 %v2022_v29  ;;  %v2023_v32 = vadd.f32 %v3076_v25, %v2014_v28  ;;  %3181 = vmatprep.subr.bf16.mxu1 %v3543_v31  ;;  %v3550_v25 = vld [vmem:[%s4631_s21 + $0x30] sm:$0xff]   ;;  %v2087_v28 = vrot.slane %v2082_v27, %v4731_v60 }
 0x9ba   : > { %2028 = vadd.xlane.f32.xlu0 %v2023_v32 }
 0x9bb   : > { %3182 = vmatpush3.bf16.msra.mxu1 %v3544_v17 }
 0x9bc   : > { %3183 = vmatprep.subr.bf16.mxu1 %v3545_v19 }
 0x9bf   : > { %3184 = vmatpush3.bf16.msra.mxu1 %v3546_v20 }
 0x9c0   : > { %3185 = vmatprep.subr.bf16.mxu1 %v3547_v21 }
 0x9c3   : > { %3186 = vmatpush3.bf16.msra.mxu1 %v3548_v23 }
 0x9c4   : > { %3187 = vmatprep.subr.bf16.mxu1 %v3549_v24 }
 0x9c7   : > { %3188 = vmatpush3.bf16.msra.mxu1 %v3550_v25 }
 0x9c8   : > { %3189 = vmatprep.subr.bf16.mxu1 %v3551_v26 }
 0x9cb   : > { %3190 = vmatpush3.bf16.msra.mxu1 %v3552_v30 }
 0xa45   : > { %v2027_v38 = vpop.xlane.xlu1 %2026 }
 0xa46   : > { %v2031_v39 = vmul.f32 0.0078125, %v2027_v38 }
 0xa47   : > { %v2029_v34 = vpop.xlane.xlu0 %2028 }
 0xa48   : > { %v2033_v40 = vsub.f32 %v2022_v29, %v2031_v39  ;;  %v2032_v41 = vmul.f32 0.0078125, %v2029_v34  ;;  %v2091_v29 = vrot.slane %v2082_v27, %v1161_v57 }
 0xa4a   : > { %v2034_v42 = vsub.f32 %v2023_v32, %v2032_v41  ;;  %v2035_v43 = vmul.f32 %v2033_v40, %v2033_v40 }
 0xa4c   : > { %2037 = vadd.xlane.f32.xlu0 %v2035_v43  ;;  %v2036_v44 = vmul.f32 %v2034_v42, %v2034_v42 }
 0xa4e   : > { %2039 = vadd.xlane.f32.xlu1 %v2036_v44 }
 0xad9   : > { %v2038_v58 = vpop.xlane.xlu0 %2037 }
 0xada   : > { %v2041_v59 = vmul.f32 0.0078125, %v2038_v58 }
 0xadb   : > { %v2040_v61 = vpop.xlane.xlu1 %2039 }
 0xadc   : > { %v2043_v18 = vadd.f32 1e-12, %v2041_v59  ;;  %v2042_v62 = vmul.f32 0.0078125, %v2040_v61 }
 0xade   : > { %3569 = vrsqrt.f32 %v2043_v18  ;;  %v2044_v63 = vadd.f32 1e-12, %v2042_v62 }
 0xae0   : > { %3571 = vrsqrt.f32 %v2044_v63 }
 0xae8   : > { %v3570_v0 = vpop.eup %3569 }
 0xae9   : > { %v2047_v2 = vmul.f32 %v3570_v0, %v2033_v40 }
 0xaea   : > { %v3572_v3 = vpop.eup %3571 }
 0xaeb   : > { %v2048_v4 = vmul.f32 %v3572_v3, %v2034_v42  ;;  %v2055_v5 = vmul.f32 %v3077_v1, %v2047_v2 }
 0xaed   : > { %v2056_v7 = vmul.f32 %v3077_v1, %v2048_v4  ;;  %v4861_v8 = vadd.f32 %v3078_v6, %v2055_v5 }
 0xaef   : > { %v4863_v9 = vadd.f32 %v3078_v6, %v2056_v7 }
 0xaf1   : > { %v2065_v10 = vpack.c.bf16 %v4863_v9, %v4861_v8 }
 0xaf3   : > { %2207 = vmatmul.mubr.bf16.vlgmr.msra.gmra.mrb[24].mxu0 %v2065_v10 }
 0xbc6   : > { %v2208_v32 = vpop.f32.mrb[24].mxu0 }
 0xbc7   : > { %v2209_v33 = vadd.f32 %v2208_v32, %v2087_v28  ;;  %v2210_v36 = vpop.f32.mrb[25].mxu0 }
 0xbc8   : > { %v2211_v37 = vadd.f32 %v2210_v36, %v2091_v29  ;;  %v2212_v52 = vpop.f32.mrb[26].mxu0 }
 0xbc9   : > { %v2221_v38 = vmul.f32 0.044715, %v2209_v33  ;;  %v2213_v39 = vadd.f32 %v2212_v52, %v2087_v28  ;;  %v2214_v34 = vpop.f32.mrb[27].mxu0  ;;  %v2217_v1 = vmul.f32 0.5, %v2209_v33 }
 0xbca   : > { %v2222_v40 = vmul.f32 0.044715, %v2211_v37  ;;  %v2215_v41 = vadd.f32 %v2214_v34, %v2091_v29  ;;  %v2218_v4 = vmul.f32 0.5, %v2211_v37 }
 0xbcb   : > { %v2225_v42 = vmul.f32 %v2221_v38, %v2209_v33  ;;  %v2223_v43 = vmul.f32 0.044715, %v2213_v39  ;;  %v2219_v2 = vmul.f32 0.5, %v2213_v39 }
 0xbcc   : > { %v2226_v44 = vmul.f32 %v2222_v40, %v2211_v37  ;;  %v2224_v35 = vmul.f32 0.044715, %v2215_v41  ;;  %v2220_v5 = vmul.f32 0.5, %v2215_v41 }
 0xbcd   : > { %v2229_v45 = vmul.f32 %v2225_v42, %v2209_v33  ;;  %v2227_v46 = vmul.f32 %v2223_v43, %v2213_v39 }
 0xbce   : > { %v2230_v22 = vmul.f32 %v2226_v44, %v2211_v37  ;;  %v2228_v47 = vmul.f32 %v2224_v35, %v2215_v41 }
 0xbcf   : > { %v2233_v56 = vadd.f32 %v2229_v45, %v2209_v33  ;;  %v2231_v57 = vmul.f32 %v2227_v46, %v2213_v39  ;;  %v3113_v45 = vld [vmem:[%s5048_s4] ss:$0 sm:$0xff] }
 0xbd0   : > { %v2232_v48 = vmul.f32 %v2228_v47, %v2215_v41  ;;  %v2234_v49 = vadd.f32 %v2230_v22, %v2211_v37 }
 0xbd1   : > { %v2237_v50 = vmul.f32 0.7978846, %v2233_v56  ;;  %v2235_v51 = vadd.f32 %v2231_v57, %v2213_v39  ;;  %v3585_v57 = vld [vmem:[#allocation20] sm:$0xff] (!%p3114_p9)  }
 0xbd2   : > { %v2236_v53 = vadd.f32 %v2232_v48, %v2215_v41  ;;  %v2238_v54 = vmul.f32 0.7978846, %v2234_v49  ;;  %v3112_v41 = vld [vmem:[%s5047_s26] ss:$0 sm:$0xff]  ;;  %v4048_v48 = vmov (!%p3114_p9), 0.0   ;;  %v3586_v49 = vld [vmem:[#allocation20 + $0x8] sm:$0xff] (!%p3114_p9)  }
 0xbd3   : > { %3573 = vtanh.f32 %v2237_v50  ;;  %v2239_v55 = vmul.f32 0.7978846, %v2235_v51  ;;  %3307 = vmatprep.subr.bf16.mxu0 (!%p3114_p9), %v4048_v48  ;;  %3327 = vmatprep.subr.bf16.mxu1 (!%p3114_p9), %v4048_v48  ;;  %v3587_v50 = vld [vmem:[#allocation20 + $0x10] sm:$0xff] (!%p3114_p9)   ;;  %v3593_v51 = vld [vmem:[#allocation21] sm:$0xff] (!%p3114_p9)  }
 0xbd4   : > { %v2240_v58 = vmul.f32 0.7978846, %v2236_v53  ;;  %3575 = vtanh.f32 %v2238_v54  ;;  %3308 = vmatpush3.bf16.msra.mxu0 (!%p3114_p9), %v3585_v57  ;;  %3323 = vmatprep.mubr.msk.bf16.mxu0 (!%p3114_p9), %vm4049_vm4, %v4048_v48  ;;  %v3588_v53 = vld [vmem:[#allocation20 + $0x18] sm:$0xff] (!%p3114_p9)   ;;  %v3594_v54 = vld [vmem:[#allocation21 + $0x8] sm:$0xff] (!%p3114_p9)  }
 0xbd5   : > { %3577 = vtanh.f32 %v2239_v55  ;;  %3309 = vmatprep.subr.bf16.mxu0 (!%p3114_p9), %v4048_v48  ;;  %v3589_v55 = vld [vmem:[#allocation20 + $0x20] sm:$0xff] (!%p3114_p9)  }
 0xbd6   : > { %3579 = vtanh.f32 %v2240_v58  ;;  %v3595_v58 = vld [vmem:[#allocation21 + $0x10] sm:$0xff] (!%p3114_p9)  }
 0xbd8   : > { %3310 = vmatpush3.bf16.msra.mxu0 (!%p3114_p9), %v3586_v49 }
 0xbd9   : > { %3311 = vmatprep.subr.bf16.mxu0 (!%p3114_p9), %v4048_v48 }
 0xbdc   : > { %3312 = vmatpush3.bf16.msra.mxu0 (!%p3114_p9), %v3587_v50 }
 0xbdd   : > { %v3574_v59 = vpop.eup %3573  ;;  %3313 = vmatprep.subr.bf16.mxu0 (!%p3114_p9), %v4048_v48 }
 0xbde   : > { %v3576_v61 = vpop.eup %3575  ;;  %v2245_v18 = vadd.f32 1.0, %v3574_v59 }
 0xbdf   : > { %v3578_v62 = vpop.eup %3577  ;;  %v2246_v63 = vadd.f32 1.0, %v3576_v61  ;;  %v3590_v61 = vld [vmem:[#allocation20 + $0x28] sm:$0xff] (!%p3114_p9)  }
 0xbe0   : > { %v3580_v0 = vpop.eup %3579  ;;  %v2247_v3 = vadd.f32 1.0, %v3578_v62  ;;  %v2249_v7 = vmul.f32 %v2245_v18, %v2217_v1  ;;  %3314 = vmatpush3.bf16.msra.mxu0 (!%p3114_p9), %v3588_v53 }
 0xbe1   : > { %v2248_v6 = vadd.f32 1.0, %v3580_v0  ;;  %v2250_v11 = vmul.f32 %v2246_v63, %v2218_v4  ;;  %3315 = vmatprep.subr.bf16.mxu0 (!%p3114_p9), %v4048_v48  ;;  %v3596_v63 = vld [vmem:[#allocation21 + $0x18] sm:$0xff] (!%p3114_p9)   ;;  %v3591_v0 = vld [vmem:[#allocation20 + $0x30] sm:$0xff] (!%p3114_p9)  }
 0xbe2   : > { %v2251_v10 = vmul.f32 %v2247_v3, %v2219_v2  ;;  %v3592_v3 = vld [vmem:[#allocation20 + $0x38] sm:$0xff] (!%p3114_p9)  }
 0xbe3   : > { %v2252_v13 = vmul.f32 %v2248_v6, %v2220_v5  ;;  %v3597_v6 = vld [vmem:[#allocation21 + $0x20] sm:$0xff] (!%p3114_p9)  }
 0xbe4   : > { %v2253_v14 = vpack.c.bf16 %v2251_v10, %v2249_v7  ;;  %3316 = vmatpush3.bf16.msra.mxu0 (!%p3114_p9), %v3589_v55  ;;  %v3598_v7 = vld [vmem:[#allocation21 + $0x28] sm:$0xff] (!%p3114_p9)   ;;  %v3599_v10 = vld [vmem:[#allocation21 + $0x30] sm:$0xff] (!%p3114_p9)  }
 0xbe5   : > { %v2254_v12 = vpack.c.bf16 %v2252_v13, %v2250_v11  ;;  %3317 = vmatprep.subr.bf16.mxu0 (!%p3114_p9), %v4048_v48  ;;  %v3600_v11 = vld [vmem:[#allocation21 + $0x38] sm:$0xff] (!%p3114_p9)   ;;  %v3115_v13 = vld [vmem:[%s5050_s29] ss:$0 sm:$0xff] (!%p3114_p9) }
 0xbe7   : > { %2422 = vmatprep.mubr.bf16.mxu1 %v2254_v12 }
 0xbe8   : > { %2423 = vmatmul.mubr.bf16.vlgmr.msra.gmra.mrb[24].mxu1 %v2253_v14  ;;  %3318 = vmatpush3.bf16.msra.mxu0 (!%p3114_p9), %v3590_v61 }
 0xbe9   : > { %3343 = vmatprep.mubr.msk.bf16.mxu1 (!%p3114_p9), %vm4049_vm4, %v4048_v48  ;;  %3328 = vmatpush3.bf16.msra.mxu1 (!%p3114_p9), %v3593_v51 }
 0xbea   : > { %3329 = vmatprep.subr.bf16.mxu1 (!%p3114_p9), %v4048_v48  ;;  %3319 = vmatprep.subr.bf16.mxu0 (!%p3114_p9), %v4048_v48 }
 0xbec   : > { %3320 = vmatpush3.bf16.msra.mxu0 (!%p3114_p9), %v3591_v0 }
 0xbed   : > { %3330 = vmatpush3.bf16.msra.mxu1 (!%p3114_p9), %v3594_v54  ;;  %3321 = vmatprep.subr.bf16.mxu0 (!%p3114_p9), %v4048_v48 }
 0xbee   : > { %3331 = vmatprep.subr.bf16.mxu1 (!%p3114_p9), %v4048_v48 }
 0xbf0   : > { %3322 = vmatpush3.bf16.msra.mxu0 (!%p3114_p9), %v3592_v3 }
 0xbf1   : > { %3332 = vmatpush3.bf16.msra.mxu1 (!%p3114_p9), %v3595_v58 }
 0xbf2   : > { %3333 = vmatprep.subr.bf16.mxu1 (!%p3114_p9), %v4048_v48 }
 0xbf5   : > { %3334 = vmatpush3.bf16.msra.mxu1 (!%p3114_p9), %v3596_v63 }
 0xbf6   : > { %3335 = vmatprep.subr.bf16.mxu1 (!%p3114_p9), %v4048_v48 }
 0xbf9   : > { %3336 = vmatpush3.bf16.msra.mxu1 (!%p3114_p9), %v3597_v6 }
 0xbfa   : > { %3337 = vmatprep.subr.bf16.mxu1 (!%p3114_p9), %v4048_v48 }
 0xbfd   : > { %3338 = vmatpush3.bf16.msra.mxu1 (!%p3114_p9), %v3598_v7 }
 0xbfe   : > { %3339 = vmatprep.subr.bf16.mxu1 (!%p3114_p9), %v4048_v48 }
 0xc01   : > { %3340 = vmatpush3.bf16.msra.mxu1 (!%p3114_p9), %v3599_v10 }
 0xc02   : > { %3341 = vmatprep.subr.bf16.mxu1 (!%p3114_p9), %v4048_v48 }
 0xc05   : > { %3342 = vmatpush3.bf16.msra.mxu1 (!%p3114_p9), %v3600_v11 }
 0xcbb   : > { %v3191_v15 = vpop.f32.mrb[24].mxu1 }
 0xcbc   : > { %v3192_v31 = vpop.f32.mrb[25].mxu1 }
 0xcbd   : > { %v3193_v17 = vadd.f32 %v3192_v31, %v3191_v15  ;;  %v3194_v19 = vpop.f32.mrb[26].mxu1 }
 0xcbe   : > { %v3195_v20 = vpop.f32.mrb[27].mxu1 }
 0xcbf   : > { %v2425_v21 = vadd.f32 %v3193_v17, %v3095_v16  ;;  %v3196_v23 = vadd.f32 %v3195_v20, %v3194_v19  ;;  %v2715_v20 = vld [vmem:[%s5051_s6] sm:$0x1] (!%p3114_p9) }
 0xcc1   : > { %v2428_v24 = vadd.f32 %v3196_v23, %v3095_v16  ;;  %v2431_v25 = vadd.f32 %v2425_v21, %v4861_v8  ;;  %v2716_v21 = vunpack.c.l.bf16 (!%p3114_p9), %v2715_v20  ;;  %v3124_v23 = vld [vmem:[%s5052_s25] ss:$0 sm:$0xff] (!%p3114_p9) }
 0xcc3   : > { %2435 = vadd.xlane.f32.xlu0 %v2431_v25  ;;  %v2432_v26 = vadd.f32 %v2428_v24, %v4863_v9 }
 0xcc5   : > { %2437 = vadd.xlane.f32.xlu1 %v2432_v26 }
 0xd50   : > { %v2436_v30 = vpop.xlane.xlu0 %2435 }
 0xd51   : > { %v2439_v27 = vmul.f32 0.0078125, %v2436_v30  ;;  %v2720_v30 = vrot.slane (!%p3114_p9), %v2716_v21, %v4731_v60 }
 0xd52   : > { %v2438_v28 = vpop.xlane.xlu1 %2437 }
 0xd53   : > { %v2441_v29 = vsub.f32 %v2431_v25, %v2439_v27  ;;  %v2440_v32 = vmul.f32 0.0078125, %v2438_v28 }
 0xd55   : > { %v2442_v33 = vsub.f32 %v2432_v26, %v2440_v32  ;;  %v2443_v36 = vmul.f32 %v2441_v29, %v2441_v29 }
 0xd57   : > { %2445 = vadd.xlane.f32.xlu0 %v2443_v36  ;;  %v2444_v37 = vmul.f32 %v2442_v33, %v2442_v33  ;;  %v3133_v36 = vld [vmem:[#allocation3] ss:$0 sm:$0xff] (!%p3114_p9) }
 0xd59   : > { %2447 = vadd.xlane.f32.xlu1 %v2444_v37 }
 0xde4   : > { %v2446_v52 = vpop.xlane.xlu0 %2445 }
 0xde5   : > { %v2449_v38 = vmul.f32 0.0078125, %v2446_v52 }
 0xde6   : > { %v2448_v39 = vpop.xlane.xlu1 %2447 }
 0xde7   : > { %v2451_v8 = vadd.f32 1e-12, %v2449_v38  ;;  %v2450_v34 = vmul.f32 0.0078125, %v2448_v39 }
 0xde9   : > { %3581 = vrsqrt.f32 %v2451_v8  ;;  %v2452_v9 = vadd.f32 1e-12, %v2450_v34 }
 0xdeb   : > { %3583 = vrsqrt.f32 %v2452_v9 }
 0xdf3   : > { %v3582_v40 = vpop.eup %3581 }
 0xdf4   : > { %v2455_v42 = vmul.f32 %v3582_v40, %v2441_v29 }
 0xdf5   : > { %v3584_v43 = vpop.eup %3583 }
 0xdf6   : > { %v2463_v44 = vmul.f32 %v3112_v41, %v2455_v42  ;;  %v2456_v35 = vmul.f32 %v3584_v43, %v2442_v33 }
 0xdf8   : > { %v2464_v46 = vmul.f32 %v3112_v41, %v2456_v35  ;;  %v2471_v22 = vadd.f32 %v3113_v45, %v2463_v44  ;;  %2478 = sbr.rel (%p3114_p9) target bundleno = 4208 (0x1070), region = 164 }
 0xdfa   : > { %v2472_v47 = vadd.f32 %v3113_v45, %v2464_v46  ;;  %v2479_v18 = vpack.c.bf16 (!%p3114_p9), %v2471_v22, %v2471_v22 }
 0xdfc   : > { %v2473_v56 = vpack.c.bf16 %v2472_v47, %v2471_v22  ;;  %v2480_v59 = vpack.c.bf16 (!%p3114_p9), %v2472_v47, %v2472_v47  ;;  %v2506_v1 = vunpack.c.l.b16 (!%p3114_p9), %v2479_v18 }
 0xdfe   : > { %2474 = vst [vmem:[#allocation2] sm:$0xff] %v2473_v56  ;;  %v2507_v62 = vunpack.c.l.b16 (!%p3114_p9), %v2480_v59 }
 0xe00   : > { %v2508_v2 = vrot.slane %v2507_v62, 7 }
 0xe02   : > { %v2510_v4 = vsel %vm2509_vm5, %v2508_v2, %v2506_v1 }
 0xe03   : > { %v2511_v5 = vpack.c.b16 %v2510_v4, %v2510_v4 }
 0xe05   : > { %3324 = vmatmul.mubr.bf16.vlgmr.msra.gmra.mrb[0].mxu0 %v2511_v5 }
 0xed8   : > { %v2595_v14 = vpop.f32.mrb[0].mxu0 }
 0xed9   : > { %v2596_v12 = vadd.f32 %v3115_v13, %v2595_v14  ;;  %v3325_v15 = vpop.f32.mrb[1].mxu0 }
 0xeda   : > { %v2598_v16 = vpop.f32.mrb[2].mxu0 }
 0xedb   : > { %3601 = vtanh.f32 %v2596_v12  ;;  %v3326_v31 = vpop.f32.mrb[3].mxu0 }
 0xee5   : > { %v3602_v17 = vpop.eup %3601 }
 0xee6   : > { %v2602_v19 = vpack.c.bf16 %v3602_v17, %v3602_v17 }
 0xee8   : > { %3344 = vmatmul.mubr.bf16.vlgmr.msra.gmra.mrb[0].mxu1 %v2602_v19 }
 0xfbb   : > { %v2708_v24 = vpop.f32.mrb[0].mxu1 }
 0xfbc   : > { %v2709_v25 = vadd.f32 %v3124_v23, %v2708_v24  ;;  %v3345_v26 = vpop.f32.mrb[1].mxu1 }
 0xfbd   : > { %v2711_v27 = vpop.f32.mrb[2].mxu1 }
 0xfbe   : > { %v2714_v28 = vmax.f32 %v2709_v25, 0.0  ;;  %v3346_v29 = vpop.f32.mrb[3].mxu1 }
 0xfc0   : > { %v2721_v32 = vmul.f32 %v2720_v30, %v2714_v28 }
 0xfc2   : > { %v2723_v33 = vsel %vm2722_vm6, %v2721_v32, 0.0 }
 0xfc3   : > { %2724 = vadd.xlane.f32.xlu0 %v2723_v33 }
0x1050   : > { %v2725_v37 = vpop.xlane.xlu0 %2724 }
0x1051   : > { %v2733_v52 = vadd.f32 %v3133_v36, %v2725_v37 }
0x1053   : > { %v2734_v38 = vsub.f32 0.0, %v2733_v52 }
0x1055   : > { %v2735_v39 = vmul.f32 1.442695, %v2734_v38 }
0x1057   : > { %3603 = vpow2.f32 %v2735_v39 }
0x1061   : > { %v3604_v8 = vpop.eup %3603 }
0x1062   : > { %v2737_v34 = vadd.f32 1.0, %v3604_v8 }
0x1064   : > { %3605 = vrcp.f32 %v2737_v34 }
0x106e   : > { %v3606_v9 = vpop.eup %3605 }
0x106f   : > { %2741 = vst.msk [vmem:[%s5053_s3] sm:$0x3] %vm2740_vm7, %v3606_v9 }
0x1070 PF: > { %s5054_s21 = sld [smem:[#allocation33_spill]]  ;;  %s5055_s9 = sld [smem:[#allocation31_spill]] }
0x1071   : > { %s5056_s4 = sld [smem:[#allocation34_spill]]  ;;  %s5057_s29 = smov %s4017_s30 }
0x1076   : > { %p50_p8 = scmp.ge.s32.totalorder %s5054_s21, 4   ;;  %s5058_s30 = smov %s5055_s9 }
0x1078   :  { %52 = sbr.rel (!%p50_p8) target bundleno = 31 (0x1f), region = 275 }
0x107f   :  { %2753 = vsyncpa [#allocation5], 1 }
0x1080   :  { %2755 = vsyncpa [#allocation5 + $0x1], 1 }
0x1081   :  { %2756 = vsyncpa [#allocation7], 1 }
0x1082   :  { %2758 = vsyncpa [#allocation7 + $0x1], 1 }
0x1083   :  { %2759 = vsyncpa [#allocation10], 1 }
0x1084   :  { %2761 = vsyncpa [#allocation10 + $0x1], 1 }
0x1085   :  { %2762 = vsyncpa [#allocation13], 1 }
0x1086   :  { %2764 = vsyncpa [#allocation13 + $0x1], 1 }
0x1087   :  { %2765 = vsyncpa [#allocation16], 1 }
0x1088   :  { %2767 = vsyncpa [#allocation16 + $0x1], 1 }
0x1089   :  { %2768 = vsyncpa [#allocation19], 1 }
0x108a   :  { %2770 = vsyncpa [#allocation19 + $0x1], 1 }
0x108b   :  { %2771 = vsyncpa [#allocation22], 1 }

</bundles_post_ra>
